<compile_context>
chip_gen: v5e
topology: v5e:2x2
jax: 0.10.0
libtpu: 0.0.40
codegen_flags: <defaults>
</compile_context>

<pallas_src>
import functools
import math

import jax
import jax.numpy as jnp
from jax.experimental import pallas as pl
from jax.experimental.pallas import tpu as pltpu


# ---------------------------------------------------------------------------
# Kernels
# ---------------------------------------------------------------------------

def _conv_relu_pool_kernel(p_ref, w_ref, b_ref, o_ref, *, fuse_matmul):
    """Fused 3x3 conv (im2col matmul) + 2x2 max-pool + bias + ReLU.

    p_ref: (4, TM, K)  patch rows, grouped by 2x2 pool-window position
    w_ref: (K, Cout)   conv weight, taps stacked along K (resident in VMEM)
    b_ref: (1, Cout)   bias
    o_ref: (TM, Cout)  pooled output rows (row = (n, y_out, x_out), row-major)
    """
    w = w_ref[...]
    cout = w.shape[1]
    if fuse_matmul:
        tm = p_ref.shape[1]
        k = p_ref.shape[2]
        # Leading-dim merge (layout no-op when TM % 8 == 0): one long MXU push.
        lhs = p_ref[...].reshape(4 * tm, k)
        z = jnp.dot(lhs, w, preferred_element_type=jnp.float32)
        zmax = jnp.max(z.reshape(4, tm, cout), axis=0)
    else:
        z0 = jnp.dot(p_ref[0], w, preferred_element_type=jnp.float32)
        z1 = jnp.dot(p_ref[1], w, preferred_element_type=jnp.float32)
        z2 = jnp.dot(p_ref[2], w, preferred_element_type=jnp.float32)
        z3 = jnp.dot(p_ref[3], w, preferred_element_type=jnp.float32)
        zmax = jnp.maximum(jnp.maximum(z0, z1), jnp.maximum(z2, z3))
    # Bias + ReLU once (hoisted out of the pool branches).
    out = jnp.maximum(zmax + b_ref[...].astype(jnp.float32), 0.0)
    o_ref[...] = out.astype(o_ref.dtype)


def _linear_kernel(x_ref, w_ref, b_ref, o_ref):
    """out = x @ w + b (f32 accumulation, matches the final nn.Linear)."""
    acc = jnp.dot(x_ref[...], w_ref[...], preferred_element_type=jnp.float32)
    o_ref[...] = (acc + b_ref[...].astype(jnp.float32)).astype(o_ref.dtype)


# ---------------------------------------------------------------------------
# Tiling helpers (VMEM-budget aware)
# ---------------------------------------------------------------------------

def _vmem_limit_bytes():
    """Per-generation scoped-VMEM limit (v5e/v6e: 128 MiB phys, v7x: 64 MiB)."""
    try:
        cap = int(pltpu.get_tpu_info().vmem_capacity_bytes)
    except Exception:
        cap = 64 * 1024 * 1024  # conservative (v7x) fallback
    return min(cap // 2, 64 * 1024 * 1024)


def _choose_row_tile(m4, k, cout, in_item, out_item, budget_bytes):
    """Largest multiple-of-8 divisor of m4 fitting the VMEM budget, keeping grid>=2."""
    # Double-buffered patch block + output block per pooled row; resident weight fixed.
    per_row = 2 * (4 * k * in_item) + 2 * (cout * out_item)
    fixed = 2 * (k * cout * in_item) + 2 * (cout * 4)
    avail = max(budget_bytes - fixed, per_row * 8)
    tm_cap = max((avail // per_row) // 8 * 8, 8)
    tm_cap = min(tm_cap, 2048)
    if m4 >= 16:
        # Keep at least 2 grid steps: DMA/compute overlap + both v7x TensorCores busy.
        tm_cap = min(tm_cap, max((m4 // 2) // 8 * 8, 8))
    best = None
    t = 8
    limit = min(tm_cap, m4)
    while t <= limit:
        if m4 % t == 0:
            best = t
        t += 8
    if best is not None:
        return best
    return m4  # tiny / awkward m4: single block (kernel falls back to per-group dots)


# ---------------------------------------------------------------------------
# Wrappers
# ---------------------------------------------------------------------------

def _im2col_pool_groups(a):
    """(N, H, W, C) activation -> (4, N*(H//2)*(W//2), 9*C) patch matrix.

    Group g = (dy*2 + dx) holds the im2col row of output pixel (2*y_out+dy, 2*x_out+dx);
    within a group rows are (n, y_out, x_out) row-major (== pooled output layout).
    """
    N, H, W, C = a.shape
    ap = jnp.pad(a, ((0, 0), (1, 1), (1, 1), (0, 0)))
    taps = [ap[:, ky:ky + H, kx:kx + W, :] for ky in range(3) for kx in range(3)]
    patches = jnp.concatenate(taps, axis=-1)            # (N, H, W, 9C)
    Ho, Wo = H // 2, W // 2
    patches = patches.reshape(N, Ho, 2, Wo, 2, 9 * C)
    patches = patches.transpose(2, 4, 0, 1, 3, 5)       # (hp, wp, n, yo, xo, 9C)
    return patches.reshape(4, N * Ho * Wo, 9 * C)


def conv3x3_relu_maxpool(a, w, b, *, compute_dtype=None):
    """a: (N, H, W, Cin) NHWC, w: (Cout, Cin, 3, 3) torch layout, b: (Cout,)
    -> (N, H//2, W//2, Cout)."""
    N, H, W, Cin = a.shape
    Cout = w.shape[0]
    assert w.shape == (Cout, Cin, 3, 3) and b.shape == (Cout,)
    assert H % 2 == 0 and W % 2 == 0

    K = 9 * Cin
    Ho, Wo = H // 2, W // 2
    M4 = N * Ho * Wo

    p = _im2col_pool_groups(a)                                   # (4, M4, K)
    wk = jnp.transpose(w, (2, 3, 1, 0)).reshape(K, Cout)         # (ky,kx,ci,co) -> (K, Cout)
    bk = b.reshape(1, Cout).astype(jnp.float32)

    out_dtype = a.dtype
    if compute_dtype is not None:
        # Cast MXU operands in the wrapper (fuses into the im2col producer):
        # halves the HBM patch stream and feeds the MXU natively; f32 accumulate.
        p = p.astype(compute_dtype)
        wk = wk.astype(compute_dtype)
        out_dtype = compute_dtype

    in_item = jnp.dtype(p.dtype).itemsize
    out_item = jnp.dtype(out_dtype).itemsize
    vmem_limit = _vmem_limit_bytes()
    TM = _choose_row_tile(M4, K, Cout, in_item, out_item, vmem_limit // 2)
    grid = (M4 // TM,)
    fuse_matmul = (TM % 8 == 0)

    out = pl.pallas_call(
        functools.partial(_conv_relu_pool_kernel, fuse_matmul=fuse_matmul),
        out_shape=jax.ShapeDtypeStruct((M4, Cout), out_dtype),
        grid_spec=pltpu.PrefetchScalarGridSpec(
            num_scalar_prefetch=0,
            grid=grid,
            in_specs=[
                pl.BlockSpec((4, TM, K), lambda j: (0, j, 0)),   # patches: stream rows
                pl.BlockSpec((K, Cout), lambda j: (0, 0)),       # weight: resident
                pl.BlockSpec((1, Cout), lambda j: (0, 0)),       # bias: resident
            ],
            out_specs=pl.BlockSpec((TM, Cout), lambda j: (j, 0)),
        ),
        compiler_params=pltpu.CompilerParams(
            dimension_semantics=("parallel",),
            vmem_limit_bytes=int(vmem_limit)),
    )(p, wk, bk)

    return out.reshape(N, Ho, Wo, Cout)


def linear(x, w_t, b):
    """x: (N, F), w_t: (F, O) already column-permuted & transposed, b: (1, O).

    Returns f32 logits (N, O)."""
    N, F = x.shape
    O = w_t.shape[1]
    out_shape = jax.ShapeDtypeStruct((N, O), jnp.float32)
    if N >= 16 and N % 8 == 0:
        TM = 8
        for t in (512, 256, 128, 64, 32, 16, 8):
            if N % t == 0:
                TM = t
                break
        return pl.pallas_call(
            _linear_kernel,
            out_shape=out_shape,
            grid_spec=pltpu.PrefetchScalarGridSpec(
                num_scalar_prefetch=0,
                grid=(N // TM,),
                in_specs=[pl.BlockSpec((TM, F), lambda i: (i, 0)),
                          pl.BlockSpec((F, O), lambda i: (0, 0)),
                          pl.BlockSpec((1, O), lambda i: (0, 0))],
                out_specs=pl.BlockSpec((TM, O), lambda i: (i, 0)),
            ),
            compiler_params=pltpu.CompilerParams(
                dimension_semantics=("parallel",)),
        )(x, w_t, b)
    # Small batch: single whole-array block.
    return pl.pallas_call(_linear_kernel, out_shape=out_shape)(x, w_t, b)


def cnn_forward(x_nchw, params, *, compute_dtype=None):
    """Full CNN forward: x (N, Cin, H, W) -> logits (N, output_size), f32."""
    a = jnp.transpose(x_nchw, (0, 2, 3, 1))                      # NCHW -> NHWC (input only)
    for (w, b) in params["convs"]:
        a = conv3x3_relu_maxpool(a, w, b, compute_dtype=compute_dtype)
    N, Hf, Wf, C = a.shape
    feat = a.reshape(N, Hf * Wf * C)                             # NHWC flatten (no transpose)
    wl, bl = params["linear"]                                    # wl: (O, C*Hf*Wf), torch order
    O = wl.shape[0]
    # Fold the torch (C,H,W)-flatten column order into the (tiny) weight once.
    wl_hwc = wl.reshape(O, C, Hf, Wf).transpose(0, 2, 3, 1).reshape(O, Hf * Wf * C)
    w_t = jnp.transpose(wl_hwc, (1, 0))                          # (F, O)
    if compute_dtype is not None:
        feat = feat.astype(compute_dtype)
        w_t = w_t.astype(compute_dtype)
    return linear(feat, w_t, bl.reshape(1, O))


# ---------------------------------------------------------------------------
# Parameter init (mirrors PyTorch Conv2d/Linear default init, deterministic)
# ---------------------------------------------------------------------------

def _uniform(key, shape, bound):
    return jax.random.uniform(key, shape, jnp.float32, -bound, bound)


def init_params(key, input_shape, output_size, hidden_size, num_layers=4):
    cin, H, W = input_shape
    n_convs = num_layers - 1
    keys = jax.random.split(key, n_convs + 1)

    convs = []
    c_prev = cin
    for i in range(n_convs):
        kw, kb = jax.random.split(keys[i])
        fan_in = c_prev * 9
        bound = 1.0 / math.sqrt(fan_in)
        w = _uniform(kw, (hidden_size, c_prev, 3, 3), bound)
        b = _uniform(kb, (hidden_size,), bound)
        convs.append((w, b))
        c_prev = hidden_size

    Hf, Wf = H // (2 ** n_convs), W // (2 ** n_convs)
    feat = hidden_size * Hf * Wf
    kw, kb = jax.random.split(keys[-1])
    bound = 1.0 / math.sqrt(feat)
    wl = _uniform(kw, (output_size, feat), bound)
    bl = _uniform(kb, (output_size,), bound)
    return {"convs": convs, "linear": (wl, bl)}


# ---------------------------------------------------------------------------
# Pure-JAX reference (independent: lax.conv + lax.reduce_window, torch flatten order)
# ---------------------------------------------------------------------------

def cnn_forward_ref(x_nchw, params):
    a = jnp.transpose(x_nchw, (0, 2, 3, 1))
    for (w, b) in params["convs"]:
        y = jax.lax.conv_general_dilated(
            a, jnp.transpose(w, (2, 3, 1, 0)),          # OIHW -> HWIO
            window_strides=(1, 1), padding="SAME",
            dimension_numbers=("NHWC", "HWIO", "NHWC"))
        y = jax.nn.relu(y + b[None, None, None, :])
        a = jax.lax.reduce_window(y, -jnp.inf, jax.lax.max,
                                  (1, 2, 2, 1), (1, 2, 2, 1), "VALID")
    N, Hf, Wf, C = a.shape
    feat = jnp.transpose(a, (0, 3, 1, 2)).reshape(N, C * Hf * Wf)
    wl, bl = params["linear"]
    return feat @ wl.T + bl[None, :]


# ---------------------------------------------------------------------------

if __name__ == "__main__":
    N = 2
    input_shape = (3, 16, 16)    # (channels, H, W), CIFAR-like but small
    hidden_size = 32
    num_layers = 4               # -> 3 conv/pool blocks, final spatial 2x2, flatten = 128
    output_size = 10

    key = jax.random.PRNGKey(0)
    kx, kp = jax.random.split(key)
    x = jax.random.normal(kx, (N,) + input_shape, dtype=jnp.float32)
    params = init_params(kp, input_shape, output_size, hidden_size, num_layers)

    ref = cnn_forward_ref(x, params)

    # f32 path (default): strict check against the independent reference.
    out = jax.block_until_ready(jax.jit(cnn_forward)(x, params))
    assert out.shape == (N, output_size), f"bad output shape {out.shape}"
    assert jnp.allclose(out, ref, atol=1e-4, rtol=1e-4), "f32 mismatch vs reference"

    # bf16 MXU-fed fast path (operands cast in the wrapper, f32 accumulation).
    fwd_bf16 = jax.jit(functools.partial(cnn_forward, compute_dtype=jnp.bfloat16))
    out_bf16 = jax.block_until_ready(fwd_bf16(x, params))
    assert out_bf16.shape == (N, output_size)
    assert jnp.allclose(out_bf16.astype(jnp.float32), ref, atol=5e-2, rtol=5e-2), \
        "bf16 mismatch vs reference"

    print("KERNEL_OK")
</pallas_src>

<mosaic_0001>
module attributes {stable_mosaic.version = 11 : i64} {
  func.func @_conv_relu_pool_kernel(%arg0: i32, %arg1: memref<4x64x27xf32, #tpu.memory_space<vmem>>, %arg2: memref<27x32xf32, #tpu.memory_space<vmem>>, %arg3: memref<1x32xf32, #tpu.memory_space<vmem>>, %arg4: memref<64x32xf32, #tpu.memory_space<vmem>>) attributes {dimension_semantics = [#tpu.dimension_semantics<parallel>], iteration_bounds = array<i64: 2>, scalar_prefetch = 0 : i64, scratch_operands = 0 : i64, tpu.core_type = #tpu.core_type<tc>, window_params = [{transform_indices = @transform_0, window_bounds = array<i64: 4, 64, 27>}, {pipeline_mode = #tpu.pipeline_mode<synchronous>, transform_indices = @transform_1, window_bounds = array<i64: 27, 32>}, {pipeline_mode = #tpu.pipeline_mode<synchronous>, transform_indices = @transform_2, window_bounds = array<i64: 1, 32>}, {transform_indices = @transform_3, window_bounds = array<i64: 64, 32>}]} {
    %c0 = arith.constant 0 : index
    %c0_0 = arith.constant 0 : index
    %0 = vector.load %arg2[%c0, %c0_0] : memref<27x32xf32, #tpu.memory_space<vmem>>, vector<27x32xf32>
    %c0_1 = arith.constant 0 : index
    %c0_2 = arith.constant 0 : index
    %c0_3 = arith.constant 0 : index
    %1 = vector.load %arg1[%c0_1, %c0_2, %c0_3] : memref<4x64x27xf32, #tpu.memory_space<vmem>>, vector<4x64x27xf32>
    %2 = vector.shape_cast %1 : vector<4x64x27xf32> to vector<256x27xf32>
    %cst = arith.constant dense<0.000000e+00> : vector<256x32xf32>
    %3 = tpu.matmul %2, %0, %cst {dimension_numbers = #tpu.dot_dimension_numbers<[1], [0], [0], [1], [0, 0, 1, 1], [], []>} : vector<256x27xf32>, vector<27x32xf32>, vector<256x32xf32> -> vector<256x32xf32>
    %4 = vector.shape_cast %3 : vector<256x32xf32> to vector<4x64x32xf32>
    %cst_4 = arith.constant dense<0xFF800000> : vector<64x32xf32>
    %5 = vector.multi_reduction <maximumf>, %4, %cst_4 [0] : vector<4x64x32xf32> to vector<64x32xf32>
    %c0_5 = arith.constant 0 : index
    %c0_6 = arith.constant 0 : index
    %6 = vector.load %arg3[%c0_5, %c0_6] : memref<1x32xf32, #tpu.memory_space<vmem>>, vector<1x32xf32>
    %7 = vector.broadcast %6 : vector<1x32xf32> to vector<64x32xf32>
    %8 = arith.addf %5, %7 : vector<64x32xf32>
    %cst_7 = arith.constant 0.000000e+00 : f32
    %9 = vector.broadcast %cst_7 : f32 to vector<64x32xf32>
    %10 = arith.maximumf %8, %9 : vector<64x32xf32>
    %c0_8 = arith.constant 0 : index
    %c0_9 = arith.constant 0 : index
    %11 = vector.load %arg4[%c0_8, %c0_9] : memref<64x32xf32, #tpu.memory_space<vmem>>, vector<64x32xf32>
    tpu.vector_store %arg4[%c0_8, %c0_9], %10 {strides = array<i32>} : memref<64x32xf32, #tpu.memory_space<vmem>>, vector<64x32xf32>,
    return
  }
  func.func @transform_0(%arg0: i32) -> (i32, i32, i32) {
    %c0_i32 = arith.constant 0 : i32
    %c0_i32_0 = arith.constant 0 : i32
    %c0_i32_1 = arith.constant 0 : i32
    return %c0_i32, %arg0, %c0_i32_0 : i32, i32, i32
  }
  func.func @transform_1(%arg0: i32) -> (i32, i32) {
    %c0_i32 = arith.constant 0 : i32
    %c0_i32_0 = arith.constant 0 : i32
    %c0_i32_1 = arith.constant 0 : i32
    return %c0_i32, %c0_i32_0 : i32, i32
  }
  func.func @transform_2(%arg0: i32) -> (i32, i32) {
    %c0_i32 = arith.constant 0 : i32
    %c0_i32_0 = arith.constant 0 : i32
    %c0_i32_1 = arith.constant 0 : i32
    return %c0_i32, %c0_i32_0 : i32, i32
  }
  func.func @transform_3(%arg0: i32) -> (i32, i32) {
    %c0_i32 = arith.constant 0 : i32
    %c0_i32_0 = arith.constant 0 : i32
    return %arg0, %c0_i32 : i32, i32
  }
}

module attributes {stable_mosaic.version = 11 : i64} {
  func.func @_conv_relu_pool_kernel(%arg0: i32, %arg1: memref<4x16x288xf32, #tpu.memory_space<vmem>>, %arg2: memref<288x32xf32, #tpu.memory_space<vmem>>, %arg3: memref<1x32xf32, #tpu.memory_space<vmem>>, %arg4: memref<16x32xf32, #tpu.memory_space<vmem>>) attributes {dimension_semantics = [#tpu.dimension_semantics<parallel>], iteration_bounds = array<i64: 2>, scalar_prefetch = 0 : i64, scratch_operands = 0 : i64, tpu.core_type = #tpu.core_type<tc>, window_params = [{transform_indices = @transform_0, window_bounds = array<i64: 4, 16, 288>}, {pipeline_mode = #tpu.pipeline_mode<synchronous>, transform_indices = @transform_1, window_bounds = array<i64: 288, 32>}, {pipeline_mode = #tpu.pipeline_mode<synchronous>, transform_indices = @transform_2, window_bounds = array<i64: 1, 32>}, {transform_indices = @transform_3, window_bounds = array<i64: 16, 32>}]} {
    %c0 = arith.constant 0 : index
    %c0_0 = arith.constant 0 : index
    %0 = vector.load %arg2[%c0, %c0_0] : memref<288x32xf32, #tpu.memory_space<vmem>>, vector<288x32xf32>
    %c0_1 = arith.constant 0 : index
    %c0_2 = arith.constant 0 : index
    %c0_3 = arith.constant 0 : index
    %1 = vector.load %arg1[%c0_1, %c0_2, %c0_3] : memref<4x16x288xf32, #tpu.memory_space<vmem>>, vector<4x16x288xf32>
    %2 = vector.shape_cast %1 : vector<4x16x288xf32> to vector<64x288xf32>
    %cst = arith.constant dense<0.000000e+00> : vector<64x32xf32>
    %3 = tpu.matmul %2, %0, %cst {dimension_numbers = #tpu.dot_dimension_numbers<[1], [0], [0], [1], [0, 0, 1, 1], [], []>} : vector<64x288xf32>, vector<288x32xf32>, vector<64x32xf32> -> vector<64x32xf32>
    %4 = vector.shape_cast %3 : vector<64x32xf32> to vector<4x16x32xf32>
    %cst_4 = arith.constant dense<0xFF800000> : vector<16x32xf32>
    %5 = vector.multi_reduction <maximumf>, %4, %cst_4 [0] : vector<4x16x32xf32> to vector<16x32xf32>
    %c0_5 = arith.constant 0 : index
    %c0_6 = arith.constant 0 : index
    %6 = vector.load %arg3[%c0_5, %c0_6] : memref<1x32xf32, #tpu.memory_space<vmem>>, vector<1x32xf32>
    %7 = vector.broadcast %6 : vector<1x32xf32> to vector<16x32xf32>
    %8 = arith.addf %5, %7 : vector<16x32xf32>
    %cst_7 = arith.constant 0.000000e+00 : f32
    %9 = vector.broadcast %cst_7 : f32 to vector<16x32xf32>
    %10 = arith.maximumf %8, %9 : vector<16x32xf32>
    %c0_8 = arith.constant 0 : index
    %c0_9 = arith.constant 0 : index
    %11 = vector.load %arg4[%c0_8, %c0_9] : memref<16x32xf32, #tpu.memory_space<vmem>>, vector<16x32xf32>
    tpu.vector_store %arg4[%c0_8, %c0_9], %10 {strides = array<i32>} : memref<16x32xf32, #tpu.memory_space<vmem>>, vector<16x32xf32>,
    return
  }
  func.func @transform_0(%arg0: i32) -> (i32, i32, i32) {
    %c0_i32 = arith.constant 0 : i32
    %c0_i32_0 = arith.constant 0 : i32
    %c0_i32_1 = arith.constant 0 : i32
    return %c0_i32, %arg0, %c0_i32_0 : i32, i32, i32
  }
  func.func @transform_1(%arg0: i32) -> (i32, i32) {
    %c0_i32 = arith.constant 0 : i32
    %c0_i32_0 = arith.constant 0 : i32
    %c0_i32_1 = arith.constant 0 : i32
    return %c0_i32, %c0_i32_0 : i32, i32
  }
  func.func @transform_2(%arg0: i32) -> (i32, i32) {
    %c0_i32 = arith.constant 0 : i32
    %c0_i32_0 = arith.constant 0 : i32
    %c0_i32_1 = arith.constant 0 : i32
    return %c0_i32, %c0_i32_0 : i32, i32
  }
  func.func @transform_3(%arg0: i32) -> (i32, i32) {
    %c0_i32 = arith.constant 0 : i32
    %c0_i32_0 = arith.constant 0 : i32
    return %arg0, %c0_i32 : i32, i32
  }
}

module attributes {stable_mosaic.version = 11 : i64} {
  func.func @_conv_relu_pool_kernel(%arg0: i32, %arg1: memref<4x8x288xf32, #tpu.memory_space<vmem>>, %arg2: memref<288x32xf32, #tpu.memory_space<vmem>>, %arg3: memref<1x32xf32, #tpu.memory_space<vmem>>, %arg4: memref<8x32xf32, #tpu.memory_space<vmem>>) attributes {dimension_semantics = [#tpu.dimension_semantics<parallel>], iteration_bounds = array<i64: 1>, scalar_prefetch = 0 : i64, scratch_operands = 0 : i64, tpu.core_type = #tpu.core_type<tc>, window_params = [{transform_indices = @transform_0, window_bounds = array<i64: 4, 8, 288>}, {pipeline_mode = #tpu.pipeline_mode<synchronous>, transform_indices = @transform_1, window_bounds = array<i64: 288, 32>}, {pipeline_mode = #tpu.pipeline_mode<synchronous>, transform_indices = @transform_2, window_bounds = array<i64: 1, 32>}, {transform_indices = @transform_3, window_bounds = array<i64: 8, 32>}]} {
    %c0 = arith.constant 0 : index
    %c0_0 = arith.constant 0 : index
    %0 = vector.load %arg2[%c0, %c0_0] : memref<288x32xf32, #tpu.memory_space<vmem>>, vector<288x32xf32>
    %c0_1 = arith.constant 0 : index
    %c0_2 = arith.constant 0 : index
    %c0_3 = arith.constant 0 : index
    %1 = vector.load %arg1[%c0_1, %c0_2, %c0_3] : memref<4x8x288xf32, #tpu.memory_space<vmem>>, vector<4x8x288xf32>
    %2 = vector.shape_cast %1 : vector<4x8x288xf32> to vector<32x288xf32>
    %cst = arith.constant dense<0.000000e+00> : vector<32x32xf32>
    %3 = tpu.matmul %2, %0, %cst {dimension_numbers = #tpu.dot_dimension_numbers<[1], [0], [0], [1], [0, 0, 1, 1], [], []>} : vector<32x288xf32>, vector<288x32xf32>, vector<32x32xf32> -> vector<32x32xf32>
    %4 = vector.shape_cast %3 : vector<32x32xf32> to vector<4x8x32xf32>
    %cst_4 = arith.constant dense<0xFF800000> : vector<8x32xf32>
    %5 = vector.multi_reduction <maximumf>, %4, %cst_4 [0] : vector<4x8x32xf32> to vector<8x32xf32>
    %c0_5 = arith.constant 0 : index
    %c0_6 = arith.constant 0 : index
    %6 = vector.load %arg3[%c0_5, %c0_6] : memref<1x32xf32, #tpu.memory_space<vmem>>, vector<1x32xf32>
    %7 = vector.broadcast %6 : vector<1x32xf32> to vector<8x32xf32>
    %8 = arith.addf %5, %7 : vector<8x32xf32>
    %cst_7 = arith.constant 0.000000e+00 : f32
    %9 = vector.broadcast %cst_7 : f32 to vector<8x32xf32>
    %10 = arith.maximumf %8, %9 : vector<8x32xf32>
    %c0_8 = arith.constant 0 : index
    %c0_9 = arith.constant 0 : index
    %11 = vector.load %arg4[%c0_8, %c0_9] : memref<8x32xf32, #tpu.memory_space<vmem>>, vector<8x32xf32>
    tpu.vector_store %arg4[%c0_8, %c0_9], %10 {strides = array<i32>} : memref<8x32xf32, #tpu.memory_space<vmem>>, vector<8x32xf32>,
    return
  }
  func.func @transform_0(%arg0: i32) -> (i32, i32, i32) {
    %c0_i32 = arith.constant 0 : i32
    %c0_i32_0 = arith.constant 0 : i32
    %c0_i32_1 = arith.constant 0 : i32
    return %c0_i32, %arg0, %c0_i32_0 : i32, i32, i32
  }
  func.func @transform_1(%arg0: i32) -> (i32, i32) {
    %c0_i32 = arith.constant 0 : i32
    %c0_i32_0 = arith.constant 0 : i32
    %c0_i32_1 = arith.constant 0 : i32
    return %c0_i32, %c0_i32_0 : i32, i32
  }
  func.func @transform_2(%arg0: i32) -> (i32, i32) {
    %c0_i32 = arith.constant 0 : i32
    %c0_i32_0 = arith.constant 0 : i32
    %c0_i32_1 = arith.constant 0 : i32
    return %c0_i32, %c0_i32_0 : i32, i32
  }
  func.func @transform_3(%arg0: i32) -> (i32, i32) {
    %c0_i32 = arith.constant 0 : i32
    %c0_i32_0 = arith.constant 0 : i32
    return %arg0, %c0_i32 : i32, i32
  }
}

module attributes {stable_mosaic.version = 11 : i64} {
  func.func @_linear_kernel(%arg0: memref<2x128xf32, #tpu.memory_space<vmem>>, %arg1: memref<128x10xf32, #tpu.memory_space<vmem>>, %arg2: memref<1x10xf32, #tpu.memory_space<vmem>>, %arg3: memref<2x10xf32, #tpu.memory_space<vmem>>) attributes {dimension_semantics = [], scalar_prefetch = 0 : i64, scratch_operands = 0 : i64, tpu.core_type = #tpu.core_type<tc>} {
    %c0 = arith.constant 0 : index
    %c0_0 = arith.constant 0 : index
    %0 = vector.load %arg0[%c0, %c0_0] : memref<2x128xf32, #tpu.memory_space<vmem>>, vector<2x128xf32>
    %c0_1 = arith.constant 0 : index
    %c0_2 = arith.constant 0 : index
    %1 = vector.load %arg1[%c0_1, %c0_2] : memref<128x10xf32, #tpu.memory_space<vmem>>, vector<128x10xf32>
    %cst = arith.constant dense<0.000000e+00> : vector<2x10xf32>
    %2 = tpu.matmul %0, %1, %cst {dimension_numbers = #tpu.dot_dimension_numbers<[1], [0], [0], [1], [0, 0, 1, 1], [], []>} : vector<2x128xf32>, vector<128x10xf32>, vector<2x10xf32> -> vector<2x10xf32>
    %c0_3 = arith.constant 0 : index
    %c0_4 = arith.constant 0 : index
    %3 = vector.load %arg2[%c0_3, %c0_4] : memref<1x10xf32, #tpu.memory_space<vmem>>, vector<1x10xf32>
    %4 = vector.broadcast %3 : vector<1x10xf32> to vector<2x10xf32>
    %5 = arith.addf %2, %4 : vector<2x10xf32>
    %c0_5 = arith.constant 0 : index
    %c0_6 = arith.constant 0 : index
    %6 = vector.load %arg3[%c0_5, %c0_6] : memref<2x10xf32, #tpu.memory_space<vmem>>, vector<2x10xf32>
    tpu.vector_store %arg3[%c0_5, %c0_6], %5 {strides = array<i32>} : memref<2x10xf32, #tpu.memory_space<vmem>>, vector<2x10xf32>,
    return
  }
}

</mosaic_0001>

<bundles_post_ra>
// kernel: cnn_forward.4
= control target key start
LH: loop header
LB: loop body
LE: loop exit
PB: predicated region body
PF: predicated region fallthrough
CT: control target
= control target key end

     0   :  { %s858_s12 = smov 0   ;;  %s860_s13 = smov 0   ;;  %s1119_s0 = inlined_call_operand.vmem [shape: f32[4,128,27], index: 0, kind: input, shape index: {}]   ;;  %s1120_s1 = inlined_call_operand.vmem [shape: f32[27,32], index: 1, kind: input, shape index: {}]   ;;  %s1121_s2 = inlined_call_operand.vmem [shape: f32[1,32], index: 2, kind: input, shape index: {}]   ;;  %s1122_s3 = inlined_call_operand.vmem [shape: f32[128,32], index: 3, kind: output, shape index: {}]  }
   0x1   :  { %s862_s14 = smov 0  }
   0x2 LB: > { %s730_s15 = sadd.s32 4294967295, %s836_s14   ;;  %s875_s16 = sadd.s32 1, %s836_s14   ;;  %s836_s14 = sphi %s862_s14, %s1125_s14   ;;  %s832_s13 = sphi %s860_s13, %s1124_s13   ;;  %s828_s12 = sphi %s858_s12, %s1123_s12  }
   0x3   : > { %s17_s17 = ssub.s32 %s836_s14, %s875_s16  ;;  %s20_s18 = sadd.s32 1, %s832_s13 }
   0x4   : > { %p18_p0 = scmp.eq.s32.totalorder %s17_s17, 0  ;;  %p27_p1 = scmp.ne.s32.totalorder %s832_s13, %s828_s12 }
   0x5   : > { %p28_p2 = scmp.eq.s32.totalorder %s836_s14, 0  ;;  %p733_p4 = scmp.ge.s32.totalorder %s836_s14, 2 }
   0x6   : > { %s884_s19 = scalar_select %p18_p0, %s832_s13, %s20_s18  }
   0x7   : > { %p29_p3 = por %p28_p2, %p27_p1  ;;  %127 = sbr.rel (%p733_p4) target bundleno = 48 (0x30), region = 24 }
   0xc   : > { %130 = sbr.rel (!%p29_p3) target bundleno = 48 (0x30), region = 28  ;;  %s132_s20 = sand.u32 (%p29_p3), 1, %s832_s13  }
   0xd   : > { %s776_s21 = sshll.u32 (%p29_p3), %s836_s14, 6  ;;  %s734_s22 = sshll.u32 (%p29_p3), %s132_s20, 8 }
   0xe   : > { %s892_s25 = scalar_lea.vmem (%p29_p3), %s1119_s0, %s776_s21  ;;  %s897_s26 = scalar_lea.vmem (%p29_p3), [#allocation2], %s734_s22 }
   0xf   : > { %v228_v0 = vld [vmem:[%s892_s25] sm:$0xff] (%p29_p3)  ;;  %v230_v1 = vld [vmem:[%s892_s25 + $0x8] sm:$0xff] (%p29_p3)  ;;  %v232_v2 = vld [vmem:[%s892_s25 + $0x10] sm:$0xff] (%p29_p3) }
  0x10   : > { %229 = vst [vmem:[%s897_s26] sm:$0xff] (%p29_p3), %v228_v0  ;;  %v234_v3 = vld [vmem:[%s892_s25 + $0x18] sm:$0xff] (%p29_p3)  ;;  %v236_v4 = vld [vmem:[%s892_s25 + $0x20] sm:$0xff] (%p29_p3)  ;;  %v238_v5 = vld [vmem:[%s892_s25 + $0x28] sm:$0xff] (%p29_p3) }
  0x11   : > { %231 = vst [vmem:[%s897_s26 + $0x8] sm:$0xff] %v230_v1  ;;  %v240_v6 = vld [vmem:[%s892_s25 + $0x30] sm:$0xff]  ;;  %v242_v7 = vld [vmem:[%s892_s25 + $0x38] sm:$0xff]  ;;  %v244_v8 = vld [vmem:[%s892_s25 + $0x80] sm:$0xff] }
  0x12   : > { %233 = vst [vmem:[%s897_s26 + $0x10] sm:$0xff] %v232_v2  ;;  %v246_v9 = vld [vmem:[%s892_s25 + $0x88] sm:$0xff]  ;;  %v248_v10 = vld [vmem:[%s892_s25 + $0x90] sm:$0xff]  ;;  %v250_v11 = vld [vmem:[%s892_s25 + $0x98] sm:$0xff] }
  0x13   : > { %235 = vst [vmem:[%s897_s26 + $0x18] sm:$0xff] %v234_v3  ;;  %v252_v12 = vld [vmem:[%s892_s25 + $0xa0] sm:$0xff]  ;;  %v254_v13 = vld [vmem:[%s892_s25 + $0xa8] sm:$0xff]  ;;  %v256_v14 = vld [vmem:[%s892_s25 + $0xb0] sm:$0xff] }
  0x14   : > { %237 = vst [vmem:[%s897_s26 + $0x20] sm:$0xff] %v236_v4  ;;  %v258_v15 = vld [vmem:[%s892_s25 + $0xb8] sm:$0xff]  ;;  %v260_v16 = vld [vmem:[%s892_s25 + $0x100] sm:$0xff]  ;;  %v262_v17 = vld [vmem:[%s892_s25 + $0x108] sm:$0xff] }
  0x15   : > { %239 = vst [vmem:[%s897_s26 + $0x28] sm:$0xff] %v238_v5  ;;  %v264_v18 = vld [vmem:[%s892_s25 + $0x110] sm:$0xff]  ;;  %v266_v19 = vld [vmem:[%s892_s25 + $0x118] sm:$0xff]  ;;  %v268_v20 = vld [vmem:[%s892_s25 + $0x120] sm:$0xff] }
  0x16   : > { %241 = vst [vmem:[%s897_s26 + $0x30] sm:$0xff] %v240_v6  ;;  %v270_v21 = vld [vmem:[%s892_s25 + $0x128] sm:$0xff]  ;;  %v272_v22 = vld [vmem:[%s892_s25 + $0x130] sm:$0xff]  ;;  %v274_v23 = vld [vmem:[%s892_s25 + $0x138] sm:$0xff] }
  0x17   : > { %243 = vst [vmem:[%s897_s26 + $0x38] sm:$0xff] %v242_v7  ;;  %v276_v24 = vld [vmem:[%s892_s25 + $0x180] sm:$0xff]  ;;  %v278_v25 = vld [vmem:[%s892_s25 + $0x188] sm:$0xff]  ;;  %v280_v26 = vld [vmem:[%s892_s25 + $0x190] sm:$0xff] }
  0x18   : > { %245 = vst [vmem:[%s897_s26 + $0x40] sm:$0xff] %v244_v8  ;;  %v282_v27 = vld [vmem:[%s892_s25 + $0x198] sm:$0xff]  ;;  %v284_v28 = vld [vmem:[%s892_s25 + $0x1a0] sm:$0xff]  ;;  %v286_v29 = vld [vmem:[%s892_s25 + $0x1a8] sm:$0xff] }
  0x19   : > { %247 = vst [vmem:[%s897_s26 + $0x48] sm:$0xff] %v246_v9  ;;  %v288_v30 = vld [vmem:[%s892_s25 + $0x1b0] sm:$0xff]  ;;  %v290_v31 = vld [vmem:[%s892_s25 + $0x1b8] sm:$0xff] }
  0x1a   : > { %249 = vst [vmem:[%s897_s26 + $0x50] sm:$0xff] %v248_v10 }
  0x1b   : > { %251 = vst [vmem:[%s897_s26 + $0x58] sm:$0xff] %v250_v11 }
  0x1c   : > { %253 = vst [vmem:[%s897_s26 + $0x60] sm:$0xff] %v252_v12 }
  0x1d   : > { %255 = vst [vmem:[%s897_s26 + $0x68] sm:$0xff] %v254_v13 }
  0x1e   : > { %257 = vst [vmem:[%s897_s26 + $0x70] sm:$0xff] %v256_v14 }
  0x1f   : > { %259 = vst [vmem:[%s897_s26 + $0x78] sm:$0xff] %v258_v15 }
  0x20   : > { %261 = vst [vmem:[%s897_s26 + $0x80] sm:$0xff] %v260_v16 }
  0x21   : > { %263 = vst [vmem:[%s897_s26 + $0x88] sm:$0xff] %v262_v17 }
  0x22   : > { %265 = vst [vmem:[%s897_s26 + $0x90] sm:$0xff] %v264_v18 }
  0x23   : > { %267 = vst [vmem:[%s897_s26 + $0x98] sm:$0xff] %v266_v19 }
  0x24   : > { %269 = vst [vmem:[%s897_s26 + $0xa0] sm:$0xff] %v268_v20 }
  0x25   : > { %271 = vst [vmem:[%s897_s26 + $0xa8] sm:$0xff] %v270_v21 }
  0x26   : > { %273 = vst [vmem:[%s897_s26 + $0xb0] sm:$0xff] %v272_v22 }
  0x27   : > { %275 = vst [vmem:[%s897_s26 + $0xb8] sm:$0xff] %v274_v23 }
  0x28   : > { %277 = vst [vmem:[%s897_s26 + $0xc0] sm:$0xff] %v276_v24 }
  0x29   : > { %279 = vst [vmem:[%s897_s26 + $0xc8] sm:$0xff] %v278_v25 }
  0x2a   : > { %281 = vst [vmem:[%s897_s26 + $0xd0] sm:$0xff] %v280_v26 }
  0x2b   : > { %283 = vst [vmem:[%s897_s26 + $0xd8] sm:$0xff] %v282_v27 }
  0x2c   : > { %285 = vst [vmem:[%s897_s26 + $0xe0] sm:$0xff] %v284_v28 }
  0x2d   : > { %287 = vst [vmem:[%s897_s26 + $0xe8] sm:$0xff] %v286_v29 }
  0x2e   : > { %289 = vst [vmem:[%s897_s26 + $0xf0] sm:$0xff] %v288_v30 }
  0x2f   : > { %291 = vst [vmem:[%s897_s26 + $0xf8] sm:$0xff] %v290_v31 }
  0x30 PF: > { %p737_p5 = scmp.ge.s32.totalorder %s836_s14, 1  ;;  %p296_p6 = scmp.lt.s32.totalorder %s836_s14, 3 }
  0x32   : > { %p297_p7 = pnand %p737_p5, %p296_p6 }
  0x33   : > { %s303_s4 = sand.u32 (!%p297_p7), 1, %s828_s12   ;;  %s739_s11 = sshll.u32 (!%p297_p7), %s730_s15, 3 }
  0x34   : > { %300 = sbr.rel (%p297_p7) target bundleno = 263 (0x107), region = 66  ;;  %s738_s5 = sshll.u32 (!%p297_p7), %s303_s4, 8 }
  0x35   : > { %s975_s10 = scalar_lea.vmem (!%p297_p7), [#allocation2], %s738_s5  ;;  %p328_p8 = scmp.lt.s32.totalorder (!%p297_p7), %s739_s11, 15 }
  0x39   : > { %v336_v32 = vld [vmem:[%s1120_s1 + $0x18] sm:$0x7]  ;;  %vm466_vm0 = vcmask 1042432   ;;  %v335_v33 = vld [vmem:[%s1120_s1 + $0x10] sm:$0xff]  ;;  %v334_v34 = vld [vmem:[%s1120_s1 + $0x8] sm:$0xff]  ;;  %vm369_vm1 = vcmask 220160  }
  0x3a   : > { %778 = vmatpush.msk.msra.mxu2 %vm466_vm0, %v336_v32  ;;  %779 = vmatpush.msk.msra.mxu3 %vm466_vm0, %v336_v32  ;;  %v333_v35 = vld [vmem:[%s1120_s1] sm:$0xff]  ;;  %v354_v40 = vld [vmem:[%s975_s10 + $0x88] sm:$0xff]  ;;  %v355_v44 = vld [vmem:[%s975_s10 + $0x90] sm:$0xff]  ;;  %vm583_vm2 = vcmask 261120   ;;  %s1127_s11 = smov (!%p328_p8, %s739_s11), 15 }
  0x3b   : > { %741 = vmatpush.msk.msra.mxu0 %vm466_vm0, %v336_v32  ;;  %777 = vmatpush.msk.msra.mxu1 %vm466_vm0, %v336_v32  ;;  %v353_v36 = vld [vmem:[%s975_s10 + $0x80] sm:$0xff]  ;;  %v362_v41 = vld [vmem:[%s975_s10 + $0xc8] sm:$0xff]  ;;  %v363_v45 = vld [vmem:[%s975_s10 + $0xd0] sm:$0xff]  ;;  %s740_s15 = sshll.u32 %s1127_s11, 3 }
  0x3c   : > { %781 = vmatpush.msra.mxu2 %v335_v33  ;;  %782 = vmatpush.msra.mxu3 %v335_v33  ;;  %v361_v37 = vld [vmem:[%s975_s10 + $0xc0] sm:$0xff]  ;;  %v338_v42 = vld [vmem:[%s975_s10 + $0x8] sm:$0xff]  ;;  %v339_v46 = vld [vmem:[%s975_s10 + $0x10] sm:$0xff]  ;;  %s1058_s20 = scalar_lea.vmem %s1122_s3, %s740_s15 }
  0x3d   : > { %483 = vmatpush.msra.mxu0 %v335_v33  ;;  %780 = vmatpush.msra.mxu1 %v335_v33  ;;  %v337_v38 = vld [vmem:[%s975_s10] sm:$0xff]  ;;  %v346_v43 = vld [vmem:[%s975_s10 + $0x48] sm:$0xff]  ;;  %v347_v47 = vld [vmem:[%s975_s10 + $0x50] sm:$0xff] }
  0x3e   : > { %784 = vmatpush.msra.mxu2 %v334_v34  ;;  %785 = vmatpush.msra.mxu3 %v334_v34  ;;  %v345_v39 = vld [vmem:[%s975_s10 + $0x40] sm:$0xff]  ;;  %v356_v48 = vld [vmem:[%s975_s10 + $0x98] sm:$0xff]  ;;  %v358_v56 = vld [vmem:[%s975_s10 + $0xa8] sm:$0xff] }
  0x3f   : > { %484 = vmatpush.msra.mxu0 %v334_v34  ;;  %783 = vmatpush.msra.mxu1 %v334_v34  ;;  %v364_v49 = vld [vmem:[%s975_s10 + $0xd8] sm:$0xff]  ;;  %v357_v52 = vld [vmem:[%s975_s10 + $0xa0] sm:$0xff]  ;;  %v366_v57 = vld [vmem:[%s975_s10 + $0xe8] sm:$0xff] }
  0x40   : > { %787 = vmatpush.msra.mxu2 %v333_v35  ;;  %788 = vmatpush.msra.mxu3 %v333_v35  ;;  %v340_v50 = vld [vmem:[%s975_s10 + $0x18] sm:$0xff]  ;;  %v365_v53 = vld [vmem:[%s975_s10 + $0xe0] sm:$0xff]  ;;  %v342_v58 = vld [vmem:[%s975_s10 + $0x28] sm:$0xff] }
  0x41   : > { %758 = vmatmul.msk.f32.vlgmr.msra.gmra.mxu2 %vm369_vm1, %v353_v36  ;;  %766 = vmatmul.msk.f32.vlgmr.msra.gmra.mxu3 %vm369_vm1, %v361_v37  ;;  %v348_v51 = vld [vmem:[%s975_s10 + $0x58] sm:$0xff]  ;;  %v341_v54 = vld [vmem:[%s975_s10 + $0x20] sm:$0xff]  ;;  %v350_v59 = vld [vmem:[%s975_s10 + $0x68] sm:$0xff] }
  0x42   : > { %485 = vmatpush.msra.mxu0 %v333_v35  ;;  %786 = vmatpush.msra.mxu1 %v333_v35  ;;  %v349_v55 = vld [vmem:[%s975_s10 + $0x60] sm:$0xff]  ;;  %v359_v60 = vld [vmem:[%s975_s10 + $0xb0] sm:$0xff]  ;;  %v360_v0 = vld [vmem:[%s975_s10 + $0xb8] sm:$0xff] }
  0x43   : > { %742 = vmatmul.msk.f32.vlgmr.msra.gmra.mxu0 %vm369_vm1, %v337_v38  ;;  %750 = vmatmul.msk.f32.vlgmr.msra.gmra.mxu1 %vm369_vm1, %v345_v39  ;;  %v367_v61 = vld [vmem:[%s975_s10 + $0xf0] sm:$0xff]  ;;  %v368_v1 = vld [vmem:[%s975_s10 + $0xf8] sm:$0xff]  ;;  %v1050_v14 = vld [vmem:[%s1121_s2] ss:$0 sm:$0xff] }
  0x44   : > { %v343_v62 = vld [vmem:[%s975_s10 + $0x30] sm:$0xff]  ;;  %v344_v2 = vld [vmem:[%s975_s10 + $0x38] sm:$0xff] }
  0x45   : > { %v351_v63 = vld [vmem:[%s975_s10 + $0x70] sm:$0xff]  ;;  %v352_v3 = vld [vmem:[%s975_s10 + $0x78] sm:$0xff] }
  0x49   : > { %759 = vmatmul.msk.f32.gmra.mxu2 %vm369_vm1, %v354_v40  ;;  %767 = vmatmul.msk.f32.gmra.mxu3 %vm369_vm1, %v362_v41 }
  0x4b   : > { %743 = vmatmul.msk.f32.gmra.mxu0 %vm369_vm1, %v338_v42  ;;  %751 = vmatmul.msk.f32.gmra.mxu1 %vm369_vm1, %v346_v43 }
  0x51   : > { %760 = vmatmul.msk.f32.gmra.mxu2 %vm369_vm1, %v355_v44  ;;  %768 = vmatmul.msk.f32.gmra.mxu3 %vm369_vm1, %v363_v45 }
  0x53   : > { %744 = vmatmul.msk.f32.gmra.mxu0 %vm369_vm1, %v339_v46  ;;  %752 = vmatmul.msk.f32.gmra.mxu1 %vm369_vm1, %v347_v47 }
  0x59   : > { %761 = vmatmul.msk.f32.gmra.mxu2 %vm369_vm1, %v356_v48  ;;  %769 = vmatmul.msk.f32.gmra.mxu3 %vm369_vm1, %v364_v49 }
  0x5b   : > { %745 = vmatmul.msk.f32.gmra.mxu0 %vm369_vm1, %v340_v50  ;;  %753 = vmatmul.msk.f32.gmra.mxu1 %vm369_vm1, %v348_v51 }
  0x61   : > { %762 = vmatmul.msk.f32.gmra.mxu2 %vm369_vm1, %v357_v52  ;;  %770 = vmatmul.msk.f32.gmra.mxu3 %vm369_vm1, %v365_v53 }
  0x63   : > { %746 = vmatmul.msk.f32.gmra.mxu0 %vm369_vm1, %v341_v54  ;;  %754 = vmatmul.msk.f32.gmra.mxu1 %vm369_vm1, %v349_v55 }
  0x69   : > { %763 = vmatmul.msk.f32.gmra.mxu2 %vm369_vm1, %v358_v56  ;;  %771 = vmatmul.msk.f32.gmra.mxu3 %vm369_vm1, %v366_v57 }
  0x6b   : > { %747 = vmatmul.msk.f32.gmra.mxu0 %vm369_vm1, %v342_v58  ;;  %755 = vmatmul.msk.f32.gmra.mxu1 %vm369_vm1, %v350_v59 }
  0x71   : > { %764 = vmatmul.msk.f32.gmra.mxu2 %vm369_vm1, %v359_v60  ;;  %772 = vmatmul.msk.f32.gmra.mxu3 %vm369_vm1, %v367_v61 }
  0x73   : > { %748 = vmatmul.msk.f32.gmra.mxu0 %vm369_vm1, %v343_v62  ;;  %756 = vmatmul.msk.f32.gmra.mxu1 %vm369_vm1, %v351_v63 }
  0x79   : > { %765 = vmatmul.msk.f32.gmra.mxu2 %vm369_vm1, %v360_v0  ;;  %773 = vmatmul.msk.f32.gmra.mxu3 %vm369_vm1, %v368_v1 }
  0x7b   : > { %749 = vmatmul.msk.f32.gmra.mxu0 %vm369_vm1, %v344_v2  ;;  %757 = vmatmul.msk.f32.gmra.mxu1 %vm369_vm1, %v352_v3 }
  0xc0   : > { %v487_v4 = vpop.f32.mrf.mxu0  ;;  %v511_v5 = vpop.f32.mrf.mxu1 }
  0xc1   : > { %v584_v6 = vsel %vm583_vm2, %v487_v4, -inf  ;;  %v585_v7 = vsel %vm583_vm2, %v511_v5, -inf }
  0xc2   : > { %v586_v8 = vmax.f32 %v584_v6, %v585_v7 }
  0xc4   : > { %v535_v9 = vpop.f32.mrf.mxu2  ;;  %v559_v10 = vpop.f32.mrf.mxu3 }
  0xc5   : > { %v587_v11 = vsel %vm583_vm2, %v535_v9, -inf  ;;  %v589_v12 = vsel %vm583_vm2, %v559_v10, -inf }
  0xc6   : > { %v588_v13 = vmax.f32 %v586_v8, %v587_v11 }
  0xc8   : > { %v590_v15 = vmax.f32 %v588_v13, %v589_v12  ;;  %v490_v16 = vpop.f32.mrf.mxu0  ;;  %v514_v17 = vpop.f32.mrf.mxu1 }
  0xc9   : > { %v591_v18 = vsel %vm583_vm2, %v490_v16, -inf  ;;  %v592_v19 = vsel %vm583_vm2, %v514_v17, -inf }
  0xca   : > { %v644_v20 = vadd.f32 %v1050_v14, %v590_v15  ;;  %v593_v21 = vmax.f32 %v591_v18, %v592_v19 }
  0xcc   : > { %v652_v22 = vmax.f32 %v644_v20, 0.0  ;;  %v538_v23 = vpop.f32.mrf.mxu2  ;;  %v562_v24 = vpop.f32.mrf.mxu3 }
  0xcd   : > { %v594_v25 = vsel %vm583_vm2, %v538_v23, -inf  ;;  %v596_v26 = vsel %vm583_vm2, %v562_v24, -inf }
  0xce   : > { %660 = vst.msk [vmem:[%s1058_s20] sm:$0xff] %vm583_vm2, %v652_v22  ;;  %v595_v27 = vmax.f32 %v593_v21, %v594_v25 }
  0xd0   : > { %v597_v28 = vmax.f32 %v595_v27, %v596_v26  ;;  %v493_v29 = vpop.f32.mrf.mxu0  ;;  %v517_v30 = vpop.f32.mrf.mxu1 }
  0xd1   : > { %v598_v31 = vsel %vm583_vm2, %v493_v29, -inf  ;;  %v599_v32 = vsel %vm583_vm2, %v517_v30, -inf }
  0xd2   : > { %v645_v33 = vadd.f32 %v1050_v14, %v597_v28  ;;  %v600_v34 = vmax.f32 %v598_v31, %v599_v32 }
  0xd4   : > { %v653_v35 = vmax.f32 %v645_v33, 0.0  ;;  %v541_v36 = vpop.f32.mrf.mxu2  ;;  %v565_v37 = vpop.f32.mrf.mxu3 }
  0xd5   : > { %v601_v38 = vsel %vm583_vm2, %v541_v36, -inf  ;;  %v603_v39 = vsel %vm583_vm2, %v565_v37, -inf }
  0xd6   : > { %661 = vst.msk [vmem:[%s1058_s20 + $0x8] sm:$0xff] %vm583_vm2, %v653_v35  ;;  %v602_v40 = vmax.f32 %v600_v34, %v601_v38 }
  0xd8   : > { %v604_v41 = vmax.f32 %v602_v40, %v603_v39  ;;  %v496_v42 = vpop.f32.mrf.mxu0  ;;  %v520_v43 = vpop.f32.mrf.mxu1 }
  0xd9   : > { %v605_v44 = vsel %vm583_vm2, %v496_v42, -inf  ;;  %v606_v45 = vsel %vm583_vm2, %v520_v43, -inf }
  0xda   : > { %v646_v46 = vadd.f32 %v1050_v14, %v604_v41  ;;  %v607_v47 = vmax.f32 %v605_v44, %v606_v45 }
  0xdc   : > { %v654_v48 = vmax.f32 %v646_v46, 0.0  ;;  %v544_v49 = vpop.f32.mrf.mxu2  ;;  %v568_v50 = vpop.f32.mrf.mxu3 }
  0xdd   : > { %v608_v51 = vsel %vm583_vm2, %v544_v49, -inf  ;;  %v610_v52 = vsel %vm583_vm2, %v568_v50, -inf }
  0xde   : > { %662 = vst.msk [vmem:[%s1058_s20 + $0x10] sm:$0xff] %vm583_vm2, %v654_v48  ;;  %v609_v53 = vmax.f32 %v607_v47, %v608_v51 }
  0xe0   : > { %v611_v54 = vmax.f32 %v609_v53, %v610_v52  ;;  %v499_v55 = vpop.f32.mrf.mxu0  ;;  %v523_v56 = vpop.f32.mrf.mxu1 }
  0xe1   : > { %v612_v57 = vsel %vm583_vm2, %v499_v55, -inf  ;;  %v613_v58 = vsel %vm583_vm2, %v523_v56, -inf }
  0xe2   : > { %v647_v59 = vadd.f32 %v1050_v14, %v611_v54  ;;  %v614_v60 = vmax.f32 %v612_v57, %v613_v58 }
  0xe4   : > { %v655_v61 = vmax.f32 %v647_v59, 0.0  ;;  %v547_v62 = vpop.f32.mrf.mxu2  ;;  %v571_v63 = vpop.f32.mrf.mxu3 }
  0xe5   : > { %v615_v0 = vsel %vm583_vm2, %v547_v62, -inf  ;;  %v617_v1 = vsel %vm583_vm2, %v571_v63, -inf }
  0xe6   : > { %663 = vst.msk [vmem:[%s1058_s20 + $0x18] sm:$0xff] %vm583_vm2, %v655_v61  ;;  %v616_v2 = vmax.f32 %v614_v60, %v615_v0 }
  0xe8   : > { %v618_v3 = vmax.f32 %v616_v2, %v617_v1  ;;  %v502_v4 = vpop.f32.mrf.mxu0  ;;  %v526_v5 = vpop.f32.mrf.mxu1 }
  0xe9   : > { %v619_v6 = vsel %vm583_vm2, %v502_v4, -inf  ;;  %v620_v7 = vsel %vm583_vm2, %v526_v5, -inf }
  0xea   : > { %v648_v8 = vadd.f32 %v1050_v14, %v618_v3  ;;  %v621_v9 = vmax.f32 %v619_v6, %v620_v7 }
  0xec   : > { %v656_v10 = vmax.f32 %v648_v8, 0.0  ;;  %v550_v11 = vpop.f32.mrf.mxu2  ;;  %v574_v12 = vpop.f32.mrf.mxu3 }
  0xed   : > { %v622_v13 = vsel %vm583_vm2, %v550_v11, -inf  ;;  %v624_v15 = vsel %vm583_vm2, %v574_v12, -inf }
  0xee   : > { %664 = vst.msk [vmem:[%s1058_s20 + $0x20] sm:$0xff] %vm583_vm2, %v656_v10  ;;  %v623_v16 = vmax.f32 %v621_v9, %v622_v13 }
  0xf0   : > { %v625_v17 = vmax.f32 %v623_v16, %v624_v15  ;;  %v505_v18 = vpop.f32.mrf.mxu0  ;;  %v529_v19 = vpop.f32.mrf.mxu1 }
  0xf1   : > { %v626_v20 = vsel %vm583_vm2, %v505_v18, -inf  ;;  %v627_v21 = vsel %vm583_vm2, %v529_v19, -inf }
  0xf2   : > { %v649_v22 = vadd.f32 %v1050_v14, %v625_v17  ;;  %v628_v23 = vmax.f32 %v626_v20, %v627_v21 }
  0xf4   : > { %v657_v24 = vmax.f32 %v649_v22, 0.0  ;;  %v553_v25 = vpop.f32.mrf.mxu2  ;;  %v577_v26 = vpop.f32.mrf.mxu3 }
  0xf5   : > { %v629_v27 = vsel %vm583_vm2, %v553_v25, -inf  ;;  %v631_v28 = vsel %vm583_vm2, %v577_v26, -inf }
  0xf6   : > { %665 = vst.msk [vmem:[%s1058_s20 + $0x28] sm:$0xff] %vm583_vm2, %v657_v24  ;;  %v630_v29 = vmax.f32 %v628_v23, %v629_v27 }
  0xf8   : > { %v632_v30 = vmax.f32 %v630_v29, %v631_v28  ;;  %v508_v31 = vpop.f32.mrf.mxu0  ;;  %v532_v32 = vpop.f32.mrf.mxu1 }
  0xf9   : > { %v633_v33 = vsel %vm583_vm2, %v508_v31, -inf  ;;  %v634_v34 = vsel %vm583_vm2, %v532_v32, -inf }
  0xfa   : > { %v650_v35 = vadd.f32 %v1050_v14, %v632_v30  ;;  %v635_v36 = vmax.f32 %v633_v33, %v634_v34 }
  0xfc   : > { %v658_v37 = vmax.f32 %v650_v35, 0.0  ;;  %v556_v38 = vpop.f32.mrf.mxu2  ;;  %v580_v39 = vpop.f32.mrf.mxu3 }
  0xfd   : > { %v636_v40 = vsel %vm583_vm2, %v556_v38, -inf  ;;  %v638_v41 = vsel %vm583_vm2, %v580_v39, -inf }
  0xfe   : > { %666 = vst.msk [vmem:[%s1058_s20 + $0x30] sm:$0xff] %vm583_vm2, %v658_v37  ;;  %v637_v42 = vmax.f32 %v635_v36, %v636_v40 }
 0x100   : > { %v639_v43 = vmax.f32 %v637_v42, %v638_v41 }
 0x102   : > { %v651_v44 = vadd.f32 %v1050_v14, %v639_v43 }
 0x104   : > { %v659_v45 = vmax.f32 %v651_v44, 0.0 }
 0x106   : > { %667 = vst.msk [vmem:[%s1058_s20 + $0x38] sm:$0xff] %vm583_vm2, %v659_v45 }
 0x107 PF: > { %p10_p9 = scmp.ge.s32.totalorder %s875_s16, 4   ;;  %s1123_s12 = smov %s832_s13 }
 0x108   : > { %s1124_s13 = smov %s884_s19  ;;  %s1125_s14 = smov %s875_s16 }
 0x109   :  { %12 = sbr.rel (!%p10_p9) target bundleno = 2 (0x2), region = 105 }

// kernel: cnn_forward.5
= control target key start
LH: loop header
LB: loop body
LE: loop exit
PB: predicated region body
PF: predicated region fallthrough
CT: control target
= control target key end

     0   :  { %s658_s12 = smov 0   ;;  %s660_s13 = smov 0   ;;  %s961_s0 = inlined_call_operand.vmem [shape: f32[4,32,288], index: 0, kind: input, shape index: {}]   ;;  %s962_s1 = inlined_call_operand.vmem [shape: f32[288,32], index: 1, kind: input, shape index: {}]   ;;  %s963_s2 = inlined_call_operand.vmem [shape: f32[1,32], index: 2, kind: input, shape index: {}]   ;;  %s964_s3 = inlined_call_operand.vmem [shape: f32[32,32], index: 3, kind: output, shape index: {}]  }
   0x1   :  { %s662_s14 = smov 0  }
   0x2 LB: > { %s534_s15 = sadd.s32 4294967295, %s636_s14   ;;  %s675_s16 = sadd.s32 1, %s636_s14   ;;  %s636_s14 = sphi %s662_s14, %s967_s14   ;;  %s632_s13 = sphi %s660_s13, %s966_s13   ;;  %s628_s12 = sphi %s658_s12, %s965_s12  }
   0x3   : > { %s17_s17 = ssub.s32 %s636_s14, %s675_s16  ;;  %s20_s18 = sadd.s32 1, %s632_s13 }
   0x4   : > { %p18_p0 = scmp.eq.s32.totalorder %s17_s17, 0  ;;  %p27_p1 = scmp.ne.s32.totalorder %s632_s13, %s628_s12 }
   0x5   : > { %p28_p2 = scmp.eq.s32.totalorder %s636_s14, 0  ;;  %p537_p4 = scmp.ge.s32.totalorder %s636_s14, 2 }
   0x6   : > { %s684_s19 = scalar_select %p18_p0, %s632_s13, %s20_s18  }
   0x7   : > { %p29_p3 = por %p28_p2, %p27_p1  ;;  %127 = sbr.rel (%p537_p4) target bundleno = 41 (0x29), region = 24 }
   0xc   : > { %130 = sbr.rel (!%p29_p3) target bundleno = 41 (0x29), region = 28  ;;  %s132_s20 = sand.u32 (%p29_p3), 1, %s632_s13  }
   0xd   : > { %s587_s21 = smul.u32 (%p29_p3), 48, %s636_s14 }
   0xe   : > { %s586_s22 = smul.u32 (%p29_p3), 192, %s132_s20 }
   0xf   : > { %s692_s25 = scalar_lea.vmem (%p29_p3), %s961_s0, %s587_s21 }
  0x10   : > { %v151_v0 = vld [vmem:[%s692_s25] sm:$0xff] (%p29_p3)  ;;  %v153_v1 = vld [vmem:[%s692_s25 + $0x8] sm:$0xff] (%p29_p3)  ;;  %v155_v2 = vld [vmem:[%s692_s25 + $0x10] sm:$0xff] (%p29_p3)  ;;  %s697_s26 = scalar_lea.vmem (%p29_p3), [#allocation2], %s586_s22 }
  0x11   : > { %152 = vst [vmem:[%s697_s26] sm:$0xff] %v151_v0  ;;  %v157_v3 = vld [vmem:[%s692_s25 + $0x18] sm:$0xff]  ;;  %v159_v4 = vld [vmem:[%s692_s25 + $0x20] sm:$0xff]  ;;  %v161_v5 = vld [vmem:[%s692_s25 + $0x28] sm:$0xff] }
  0x12   : > { %154 = vst [vmem:[%s697_s26 + $0x8] sm:$0xff] %v153_v1  ;;  %v163_v6 = vld [vmem:[%s692_s25 + $0x60] sm:$0xff]  ;;  %v165_v7 = vld [vmem:[%s692_s25 + $0x68] sm:$0xff]  ;;  %v167_v8 = vld [vmem:[%s692_s25 + $0x70] sm:$0xff] }
  0x13   : > { %156 = vst [vmem:[%s697_s26 + $0x10] sm:$0xff] %v155_v2  ;;  %v169_v9 = vld [vmem:[%s692_s25 + $0x78] sm:$0xff]  ;;  %v171_v10 = vld [vmem:[%s692_s25 + $0x80] sm:$0xff]  ;;  %v173_v11 = vld [vmem:[%s692_s25 + $0x88] sm:$0xff] }
  0x14   : > { %158 = vst [vmem:[%s697_s26 + $0x18] sm:$0xff] %v157_v3  ;;  %v175_v12 = vld [vmem:[%s692_s25 + $0xc0] sm:$0xff]  ;;  %v177_v13 = vld [vmem:[%s692_s25 + $0xc8] sm:$0xff]  ;;  %v179_v14 = vld [vmem:[%s692_s25 + $0xd0] sm:$0xff] }
  0x15   : > { %160 = vst [vmem:[%s697_s26 + $0x20] sm:$0xff] %v159_v4  ;;  %v181_v15 = vld [vmem:[%s692_s25 + $0xd8] sm:$0xff]  ;;  %v183_v16 = vld [vmem:[%s692_s25 + $0xe0] sm:$0xff]  ;;  %v185_v17 = vld [vmem:[%s692_s25 + $0xe8] sm:$0xff] }
  0x16   : > { %162 = vst [vmem:[%s697_s26 + $0x28] sm:$0xff] %v161_v5  ;;  %v187_v18 = vld [vmem:[%s692_s25 + $0x120] sm:$0xff]  ;;  %v189_v19 = vld [vmem:[%s692_s25 + $0x128] sm:$0xff]  ;;  %v191_v20 = vld [vmem:[%s692_s25 + $0x130] sm:$0xff] }
  0x17   : > { %164 = vst [vmem:[%s697_s26 + $0x30] sm:$0xff] %v163_v6  ;;  %v193_v21 = vld [vmem:[%s692_s25 + $0x138] sm:$0xff]  ;;  %v195_v22 = vld [vmem:[%s692_s25 + $0x140] sm:$0xff]  ;;  %v197_v23 = vld [vmem:[%s692_s25 + $0x148] sm:$0xff] }
  0x18   : > { %166 = vst [vmem:[%s697_s26 + $0x38] sm:$0xff] %v165_v7 }
  0x19   : > { %168 = vst [vmem:[%s697_s26 + $0x40] sm:$0xff] %v167_v8 }
  0x1a   : > { %170 = vst [vmem:[%s697_s26 + $0x48] sm:$0xff] %v169_v9 }
  0x1b   : > { %172 = vst [vmem:[%s697_s26 + $0x50] sm:$0xff] %v171_v10 }
  0x1c   : > { %174 = vst [vmem:[%s697_s26 + $0x58] sm:$0xff] %v173_v11 }
  0x1d   : > { %176 = vst [vmem:[%s697_s26 + $0x60] sm:$0xff] %v175_v12 }
  0x1e   : > { %178 = vst [vmem:[%s697_s26 + $0x68] sm:$0xff] %v177_v13 }
  0x1f   : > { %180 = vst [vmem:[%s697_s26 + $0x70] sm:$0xff] %v179_v14 }
  0x20   : > { %182 = vst [vmem:[%s697_s26 + $0x78] sm:$0xff] %v181_v15 }
  0x21   : > { %184 = vst [vmem:[%s697_s26 + $0x80] sm:$0xff] %v183_v16 }
  0x22   : > { %186 = vst [vmem:[%s697_s26 + $0x88] sm:$0xff] %v185_v17 }
  0x23   : > { %188 = vst [vmem:[%s697_s26 + $0x90] sm:$0xff] %v187_v18 }
  0x24   : > { %190 = vst [vmem:[%s697_s26 + $0x98] sm:$0xff] %v189_v19 }
  0x25   : > { %192 = vst [vmem:[%s697_s26 + $0xa0] sm:$0xff] %v191_v20 }
  0x26   : > { %194 = vst [vmem:[%s697_s26 + $0xa8] sm:$0xff] %v193_v21 }
  0x27   : > { %196 = vst [vmem:[%s697_s26 + $0xb0] sm:$0xff] %v195_v22 }
  0x28   : > { %198 = vst [vmem:[%s697_s26 + $0xb8] sm:$0xff] %v197_v23 }
  0x29 PF: > { %p541_p5 = scmp.ge.s32.totalorder %s636_s14, 1  ;;  %p203_p6 = scmp.lt.s32.totalorder %s636_s14, 3 }
  0x2b   : > { %p204_p7 = pnand %p541_p5, %p203_p6 }
  0x2c   : > { %s210_s6 = sand.u32 (!%p204_p7), 1, %s628_s12  }
  0x2d   : > { %207 = sbr.rel (%p204_p7) target bundleno = 268 (0x10c), region = 51 }
  0x2e   : > { %s588_s11 = smul.u32 (!%p204_p7), 192, %s210_s6 }
  0x30   : > { %s811_s18 = scalar_lea.vmem (!%p204_p7), [#allocation2], %s588_s11 }
  0x32   : > { %v255_v24 = vld [vmem:[%s962_s1 + $0x78] sm:$0xff]  ;;  %v254_v26 = vld [vmem:[%s962_s1 + $0x70] sm:$0xff]  ;;  %v253_v28 = vld [vmem:[%s962_s1 + $0x68] sm:$0xff]  ;;  %vm300_vm0 = vcmask 261120  }
  0x33   : > { %v752_v25 = vld [vmem:[%s962_s1 + $0xf8] sm:$0xff]  ;;  %325 = vmatpush.msra.mxu0 %v255_v24  ;;  %554 = vmatpush.msra.mxu3 %v255_v24  ;;  %v761_v27 = vld [vmem:[%s962_s1 + $0xf0] sm:$0xff]  ;;  %v770_v29 = vld [vmem:[%s962_s1 + $0xe8] sm:$0xff] }
  0x34   : > { %366 = vmatpush.msra.mxu1 %v752_v25  ;;  %v275_v30 = vld [vmem:[%s962_s1 + $0x118] sm:$0xff]  ;;  %v252_v31 = vld [vmem:[%s962_s1 + $0x60] sm:$0xff]  ;;  %v274_v32 = vld [vmem:[%s962_s1 + $0x110] sm:$0xff] }
  0x35   : > { %326 = vmatpush.msra.mxu0 %v254_v26  ;;  %555 = vmatpush.msra.mxu3 %v254_v26  ;;  %v785_v33 = vld [vmem:[%s962_s1 + $0xe0] sm:$0xff]  ;;  %v273_v34 = vld [vmem:[%s962_s1 + $0x108] sm:$0xff]  ;;  %v251_v35 = vld [vmem:[%s962_s1 + $0x58] sm:$0xff] }
  0x36   : > { %367 = vmatpush.msra.mxu1 %v761_v27  ;;  %419 = vmatpush.msra.mxu2 %v275_v30  ;;  %v797_v36 = vld [vmem:[%s962_s1 + $0xd8] sm:$0xff]  ;;  %v272_v37 = vld [vmem:[%s962_s1 + $0x100] sm:$0xff]  ;;  %v250_v38 = vld [vmem:[%s962_s1 + $0x50] sm:$0xff] }
  0x37   : > { %327 = vmatpush.msra.mxu0 %v253_v28  ;;  %556 = vmatpush.msra.mxu3 %v253_v28  ;;  %v809_v39 = vld [vmem:[%s962_s1 + $0xd0] sm:$0xff]  ;;  %v249_v41 = vld [vmem:[%s962_s1 + $0x48] sm:$0xff]  ;;  %v248_v43 = vld [vmem:[%s962_s1 + $0x40] sm:$0xff] }
  0x38   : > { %368 = vmatpush.msra.mxu1 %v770_v29  ;;  %420 = vmatpush.msra.mxu2 %v274_v32  ;;  %v278_v40 = vld [vmem:[%s811_s18 + $0x10] sm:$0xff]  ;;  %v821_v42 = vld [vmem:[%s962_s1 + $0xc8] sm:$0xff]  ;;  %v831_v44 = vld [vmem:[%s962_s1 + $0xc0] sm:$0xff] }
  0x39   : > { %328 = vmatpush.msra.mxu0 %v252_v31  ;;  %557 = vmatpush.msra.mxu3 %v252_v31  ;;  %v247_v45 = vld [vmem:[%s962_s1 + $0x38] sm:$0xff]  ;;  %v246_v47 = vld [vmem:[%s962_s1 + $0x30] sm:$0xff]  ;;  %v281_v49 = vld [vmem:[%s811_s18 + $0x28] sm:$0xff] }
  0x3a   : > { %369 = vmatpush.msra.mxu1 %v785_v33  ;;  %421 = vmatpush.msra.mxu2 %v273_v34  ;;  %v840_v46 = vld [vmem:[%s962_s1 + $0xb8] sm:$0xff]  ;;  %v849_v48 = vld [vmem:[%s962_s1 + $0xb0] sm:$0xff]  ;;  %v245_v50 = vld [vmem:[%s962_s1 + $0x28] sm:$0xff] }
  0x3b   : > { %329 = vmatpush.msra.mxu0 %v251_v35  ;;  %558 = vmatpush.msra.mxu3 %v251_v35  ;;  %v859_v51 = vld [vmem:[%s962_s1 + $0xa8] sm:$0xff]  ;;  %v244_v52 = vld [vmem:[%s962_s1 + $0x20] sm:$0xff]  ;;  %v243_v54 = vld [vmem:[%s962_s1 + $0x18] sm:$0xff] }
  0x3c   : > { %370 = vmatpush.msra.mxu1 %v797_v36  ;;  %422 = vmatpush.msra.mxu2 %v272_v37  ;;  %v260_v53 = vld [vmem:[%s962_s1 + $0xa0] sm:$0xff]  ;;  %v259_v55 = vld [vmem:[%s962_s1 + $0x98] sm:$0xff]  ;;  %v242_v56 = vld [vmem:[%s962_s1 + $0x10] sm:$0xff] }
  0x3d   : > { %330 = vmatpush.msra.mxu0 %v250_v38  ;;  %559 = vmatpush.msra.mxu3 %v250_v38  ;;  %v258_v57 = vld [vmem:[%s962_s1 + $0x90] sm:$0xff]  ;;  %v284_v58 = vld [vmem:[%s811_s18 + $0x40] sm:$0xff]  ;;  %v241_v59 = vld [vmem:[%s962_s1 + $0x8] sm:$0xff] }
  0x3e   : > { %371 = vmatpush.msra.mxu1 %v809_v39  ;;  %544 = vmatmul.msk.f32.vlgmr.msra.gmra.mxu2 %vm300_vm0, %v278_v40  ;;  %v257_v60 = vld [vmem:[%s962_s1 + $0x88] sm:$0xff]  ;;  %v240_v61 = vld [vmem:[%s962_s1] sm:$0xff]  ;;  %v294_v1 = vld [vmem:[%s811_s18 + $0x90] sm:$0xff] }
  0x3f   : > { %331 = vmatpush.msra.mxu0 %v249_v41  ;;  %560 = vmatpush.msra.mxu3 %v249_v41  ;;  %v256_v62 = vld [vmem:[%s962_s1 + $0x80] sm:$0xff]  ;;  %v277_v0 = vld [vmem:[%s811_s18 + $0x8] sm:$0xff]  ;;  %v287_v2 = vld [vmem:[%s811_s18 + $0x58] sm:$0xff] }
  0x40   : > { %372 = vmatpush.msra.mxu1 %v821_v42  ;;  %v276_v63 = vld [vmem:[%s811_s18] sm:$0xff]  ;;  %v279_v3 = vld [vmem:[%s811_s18 + $0x18] sm:$0xff]  ;;  %v297_v5 = vld [vmem:[%s811_s18 + $0xa8] sm:$0xff] }
  0x41   : > { %332 = vmatpush.msra.mxu0 %v248_v43  ;;  %561 = vmatpush.msra.mxu3 %v248_v43  ;;  %v280_v4 = vld [vmem:[%s811_s18 + $0x20] sm:$0xff]  ;;  %v290_v6 = vld [vmem:[%s811_s18 + $0x70] sm:$0xff]  ;;  %v283_v8 = vld [vmem:[%s811_s18 + $0x38] sm:$0xff] }
  0x42   : > { %373 = vmatpush.msra.mxu1 %v831_v44  ;;  %v282_v7 = vld [vmem:[%s811_s18 + $0x30] sm:$0xff]  ;;  %v293_v9 = vld [vmem:[%s811_s18 + $0x88] sm:$0xff]  ;;  %v296_v12 = vld [vmem:[%s811_s18 + $0xa0] sm:$0xff] }
  0x43   : > { %333 = vmatpush.msra.mxu0 %v247_v45  ;;  %562 = vmatpush.msra.mxu3 %v247_v45  ;;  %v285_v10 = vld [vmem:[%s811_s18 + $0x48] sm:$0xff]  ;;  %v286_v11 = vld [vmem:[%s811_s18 + $0x50] sm:$0xff]  ;;  %v295_v13 = vld [vmem:[%s811_s18 + $0x98] sm:$0xff] }
  0x44   : > { %374 = vmatpush.msra.mxu1 %v840_v46  ;;  %v288_v14 = vld [vmem:[%s811_s18 + $0x60] sm:$0xff]  ;;  %v289_v15 = vld [vmem:[%s811_s18 + $0x68] sm:$0xff]  ;;  %v299_v16 = vld [vmem:[%s811_s18 + $0xb8] sm:$0xff] }
  0x45   : > { %334 = vmatpush.msra.mxu0 %v246_v47  ;;  %563 = vmatpush.msra.mxu3 %v246_v47  ;;  %v298_v17 = vld [vmem:[%s811_s18 + $0xb0] sm:$0xff]  ;;  %v291_v18 = vld [vmem:[%s811_s18 + $0x78] sm:$0xff]  ;;  %v292_v19 = vld [vmem:[%s811_s18 + $0x80] sm:$0xff]  ;;  %s542_s18 = sshll.u32 %s534_s15, 1 }
  0x46   : > { %375 = vmatpush.msra.mxu1 %v849_v48  ;;  %545 = vmatmul.msk.f32.gmra.mxu2 %vm300_vm0, %v281_v49  ;;  %p235_p8 = scmp.lt.s32.totalorder %s542_s18, 3 }
  0x47   : > { %335 = vmatpush.msra.mxu0 %v245_v50  ;;  %564 = vmatpush.msra.mxu3 %v245_v50 }
  0x48   : > { %376 = vmatpush.msra.mxu1 %v859_v51  ;;  %s969_s18 = smov (!%p235_p8, %s542_s18), 3 }
  0x49   : > { %336 = vmatpush.msra.mxu0 %v244_v52  ;;  %565 = vmatpush.msra.mxu3 %v244_v52  ;;  %s543_s10 = sshll.u32 %s969_s18, 3 }
  0x4a   : > { %377 = vmatpush.msra.mxu1 %v260_v53  ;;  %s238_s20 = scalar_lea.vmem %s964_s3, %s543_s10 }
  0x4b   : > { %337 = vmatpush.msra.mxu0 %v243_v54  ;;  %566 = vmatpush.msra.mxu3 %v243_v54 }
  0x4c   : > { %378 = vmatpush.msra.mxu1 %v259_v55 }
  0x4d   : > { %338 = vmatpush.msra.mxu0 %v242_v56  ;;  %567 = vmatpush.msra.mxu3 %v242_v56 }
  0x4e   : > { %379 = vmatpush.msra.mxu1 %v258_v57  ;;  %546 = vmatmul.msk.f32.gmra.mxu2 %vm300_vm0, %v284_v58 }
  0x4f   : > { %339 = vmatpush.msra.mxu0 %v241_v59  ;;  %568 = vmatpush.msra.mxu3 %v241_v59  ;;  %v613_v59 = vld [vmem:[%s963_s2] ss:$0 sm:$0xff] }
  0x50   : > { %380 = vmatpush.msra.mxu1 %v257_v60 }
  0x51   : > { %340 = vmatpush.msra.mxu0 %v240_v61  ;;  %569 = vmatpush.msra.mxu3 %v240_v61 }
  0x52   : > { %381 = vmatpush.msra.mxu1 %v256_v62  ;;  %341 = vmatmul.f32.vlgmr.msra.gmra.mxu0 %v276_v63 }
  0x53   : > { %570 = vmatpush.msrb.mxu3 %v752_v25  ;;  %382 = vmatmul.f32.vlgmr.msra.gmra.mxu1 %v277_v0 }
  0x54   : > { %359 = vmatmul.f32.vlgmr.msra.gmra.mxu3 %v294_v1 }
  0x55   : > { %571 = vmatpush.msrb.mxu3 %v761_v27 }
  0x56   : > { %547 = vmatmul.msk.f32.gmra.mxu2 %vm300_vm0, %v287_v2 }
  0x57   : > { %572 = vmatpush.msrb.mxu3 %v770_v29 }
  0x59   : > { %573 = vmatpush.msrb.mxu3 %v785_v33 }
  0x5a   : > { %344 = vmatmul.f32.gmra.mxu0 %v279_v3 }
  0x5b   : > { %574 = vmatpush.msrb.mxu3 %v797_v36  ;;  %385 = vmatmul.f32.gmra.mxu1 %v280_v4 }
  0x5c   : > { %362 = vmatmul.f32.gmra.mxu3 %v297_v5 }
  0x5d   : > { %575 = vmatpush.msrb.mxu3 %v809_v39 }
  0x5e   : > { %548 = vmatmul.msk.f32.gmra.mxu2 %vm300_vm0, %v290_v6 }
  0x5f   : > { %576 = vmatpush.msrb.mxu3 %v821_v42 }
  0x61   : > { %577 = vmatpush.msrb.mxu3 %v831_v44 }
  0x62   : > { %347 = vmatmul.f32.gmra.mxu0 %v282_v7 }
  0x63   : > { %578 = vmatpush.msrb.mxu3 %v840_v46  ;;  %388 = vmatmul.f32.gmra.mxu1 %v283_v8 }
  0x65   : > { %579 = vmatpush.msrb.mxu3 %v849_v48 }
  0x66   : > { %549 = vmatmul.msk.f32.gmra.mxu2 %vm300_vm0, %v293_v9 }
  0x67   : > { %580 = vmatpush.msrb.mxu3 %v859_v51 }
  0x69   : > { %581 = vmatpush.msrb.mxu3 %v260_v53 }
  0x6a   : > { %350 = vmatmul.f32.gmra.mxu0 %v285_v10 }
  0x6b   : > { %582 = vmatpush.msrb.mxu3 %v259_v55  ;;  %391 = vmatmul.f32.gmra.mxu1 %v286_v11 }
  0x6d   : > { %583 = vmatpush.msrb.mxu3 %v258_v57 }
  0x6e   : > { %550 = vmatmul.msk.f32.gmra.mxu2 %vm300_vm0, %v296_v12 }
  0x6f   : > { %584 = vmatpush.msrb.mxu3 %v257_v60 }
  0x71   : > { %585 = vmatpush.msrb.mxu3 %v256_v62 }
  0x72   : > { %400 = vmatmul.f32.vlgmr.msrb.gmra.mxu3 %v295_v13  ;;  %353 = vmatmul.f32.gmra.mxu0 %v288_v14 }
  0x73   : > { %394 = vmatmul.f32.gmra.mxu1 %v289_v15 }
  0x76   : > { %551 = vmatmul.msk.f32.gmra.mxu2 %vm300_vm0, %v299_v16 }
  0x7a   : > { %403 = vmatmul.f32.gmra.mxu3 %v298_v17  ;;  %356 = vmatmul.f32.gmra.mxu0 %v291_v18 }
  0x7b   : > { %397 = vmatmul.f32.gmra.mxu1 %v292_v19 }
  0xc1   : > { %v424_v20 = vpop.f32.mrf.mxu2 }
  0xc9   : > { %v427_v21 = vpop.f32.mrf.mxu2 }
  0xcf   : > { %v342_v22 = vpop.f32.mrf.mxu0 }
  0xd0   : > { %v383_v23 = vpop.f32.mrf.mxu1 }
  0xd1   : > { %v430_v24 = vpop.f32.mrf.mxu2  ;;  %v384_v38 = vadd.f32 %v383_v23, %v342_v22 }
  0xd3   : > { %v425_v43 = vadd.f32 %v424_v20, %v384_v38 }
  0xd5   : > { %v448_v51 = vsel %vm300_vm0, %v425_v43, -inf }
  0xd7   : > { %v345_v25 = vpop.f32.mrf.mxu0  ;;  %v360_v30 = vpop.f32.mrf.mxu3 }
  0xd8   : > { %v386_v26 = vpop.f32.mrf.mxu1 }
  0xd9   : > { %v433_v27 = vpop.f32.mrf.mxu2  ;;  %v387_v53 = vadd.f32 %v386_v26, %v345_v25 }
  0xdb   : > { %v428_v0 = vadd.f32 %v427_v21, %v387_v53 }
  0xdd   : > { %v455_v7 = vsel %vm300_vm0, %v428_v0, -inf }
  0xdf   : > { %v348_v28 = vpop.f32.mrf.mxu0  ;;  %v363_v35 = vpop.f32.mrf.mxu3 }
  0xe0   : > { %v389_v29 = vpop.f32.mrf.mxu1 }
  0xe1   : > { %v436_v31 = vpop.f32.mrf.mxu2  ;;  %v390_v40 = vadd.f32 %v389_v29, %v348_v28 }
  0xe3   : > { %v431_v45 = vadd.f32 %v430_v24, %v390_v40 }
  0xe5   : > { %v449_v55 = vsel %vm300_vm0, %v431_v45, -inf }
  0xe7   : > { %v351_v32 = vpop.f32.mrf.mxu0 }
  0xe8   : > { %v392_v33 = vpop.f32.mrf.mxu1 }
  0xe9   : > { %v439_v34 = vpop.f32.mrf.mxu2  ;;  %v393_v54 = vadd.f32 %v392_v33, %v351_v32 }
  0xeb   : > { %v434_v1 = vadd.f32 %v433_v27, %v393_v54 }
  0xed   : > { %v456_v8 = vsel %vm300_vm0, %v434_v1, -inf }
  0xef   : > { %v354_v36 = vpop.f32.mrf.mxu0 }
  0xf0   : > { %v395_v37 = vpop.f32.mrf.mxu1 }
  0xf1   : > { %v396_v39 = vadd.f32 %v395_v37, %v354_v36  ;;  %v442_v41 = vpop.f32.mrf.mxu2 }
  0xf3   : > { %v437_v42 = vadd.f32 %v436_v31, %v396_v39 }
  0xf5   : > { %v401_v44 = vpop.f32.mrf.mxu3  ;;  %v450_v48 = vsel %vm300_vm0, %v437_v42, -inf }
  0xf6   : > { %v402_v46 = vadd.f32 %v401_v44, %v360_v30  ;;  %v451_v57 = vmax.f32 %v448_v51, %v450_v48 }
  0xf7   : > { %v357_v47 = vpop.f32.mrf.mxu0 }
  0xf8   : > { %v443_v49 = vadd.f32 %v442_v41, %v402_v46  ;;  %v398_v50 = vpop.f32.mrf.mxu1 }
  0xf9   : > { %v399_v52 = vadd.f32 %v398_v50, %v357_v47  ;;  %v445_v63 = vpop.f32.mrf.mxu2 }
  0xfa   : > { %v452_v56 = vsel %vm300_vm0, %v443_v49, -inf }
  0xfb   : > { %v453_v58 = vmax.f32 %v449_v55, %v452_v56  ;;  %v440_v60 = vadd.f32 %v439_v34, %v399_v52 }
  0xfd   : > { %v454_v61 = vmax.f32 %v451_v57, %v453_v58  ;;  %v404_v62 = vpop.f32.mrf.mxu3  ;;  %v457_v4 = vsel %vm300_vm0, %v440_v60, -inf }
  0xfe   : > { %v405_v2 = vadd.f32 %v404_v62, %v363_v35  ;;  %v458_v10 = vmax.f32 %v455_v7, %v457_v4 }
  0xff   : > { %v466_v3 = vadd.f32 %v613_v59, %v454_v61 }
 0x100   : > { %v446_v5 = vadd.f32 %v445_v63, %v405_v2 }
 0x101   : > { %v468_v6 = vmax.f32 %v466_v3, 0.0 }
 0x102   : > { %v459_v9 = vsel %vm300_vm0, %v446_v5, -inf }
 0x103   : > { %470 = vst.msk [vmem:[%s238_s20] sm:$0xff] %vm300_vm0, %v468_v6  ;;  %v460_v11 = vmax.f32 %v456_v8, %v459_v9 }
 0x105   : > { %v461_v12 = vmax.f32 %v458_v10, %v460_v11 }
 0x107   : > { %v467_v13 = vadd.f32 %v613_v59, %v461_v12 }
 0x109   : > { %v469_v14 = vmax.f32 %v467_v13, 0.0 }
 0x10b   : > { %471 = vst.msk [vmem:[%s238_s20 + $0x8] sm:$0xff] %vm300_vm0, %v469_v14 }
 0x10c PF: > { %p10_p9 = scmp.ge.s32.totalorder %s675_s16, 4   ;;  %s965_s12 = smov %s632_s13 }
 0x10d   : > { %s966_s13 = smov %s684_s19  ;;  %s967_s14 = smov %s675_s16 }
 0x10e   :  { %12 = sbr.rel (!%p10_p9) target bundleno = 2 (0x2), region = 90 }

// kernel: cnn_forward.7
= control target key start
LH: loop header
LB: loop body
LE: loop exit
PB: predicated region body
PF: predicated region fallthrough
CT: control target
= control target key end

     0   :  { %s180_s0 = inlined_call_operand.vmem [shape: f32[2,128], index: 0, kind: input, shape index: {}]   ;;  %s181_s1 = inlined_call_operand.vmem [shape: f32[128,10], index: 1, kind: input, shape index: {}]   ;;  %s182_s2 = inlined_call_operand.vmem [shape: f32[1,10], index: 2, kind: input, shape index: {}]   ;;  %s183_s3 = inlined_call_operand.hbm [shape: f32[2,10], index: 3, kind: output, shape index: {}]  }
   0x1   :  { %v31_v0 = vld [vmem:[%s181_s1 + $0x78] sm:$0xff]  ;;  %v30_v1 = vld [vmem:[%s181_s1 + $0x70] sm:$0xff]  ;;  %v29_v2 = vld [vmem:[%s181_s1 + $0x68] sm:$0xff] }
   0x2   :  { %36 = vmatpush.msra.mxu0 %v31_v0  ;;  %v28_v3 = vld [vmem:[%s181_s1 + $0x60] sm:$0xff]  ;;  %v27_v4 = vld [vmem:[%s181_s1 + $0x58] sm:$0xff] }
   0x4   :  { %37 = vmatpush.msra.mxu0 %v30_v1 }
   0x6   :  { %38 = vmatpush.msra.mxu0 %v29_v2 }
   0x7   :  { %8 = vsyncpa [#allocation3], 0  ;;  %v26_v5 = vld [vmem:[%s181_s1 + $0x50] sm:$0xff]  ;;  %v25_v6 = vld [vmem:[%s181_s1 + $0x48] sm:$0xff]  ;;  %s102_s21 = smov [#allocation2]   ;;  %s65_s25 = sshll.u32 %s183_s3, 4  ;;  %s66_s25 = int_to_ptr.hbm [resolvable:$true] %s65_s25 }
   0x8   :  { %39 = vmatpush.msra.mxu0 %v28_v3  ;;  %v24_v7 = vld [vmem:[%s181_s1 + $0x40] sm:$0xff]  ;;  %v23_v8 = vld [vmem:[%s181_s1 + $0x38] sm:$0xff]  ;;  %v22_v9 = vld [vmem:[%s181_s1 + $0x30] sm:$0xff]  ;;  %s63_s22 = sshll.u32 %s102_s21, 4  ;;  %vm56_vm0 = vcmask 74752   ;;  %s64_s22 = int_to_ptr.vmem [resolvable:$true] %s63_s22 }
   0x9   :  { %v21_v10 = vld [vmem:[%s181_s1 + $0x28] sm:$0xff]  ;;  %v20_v11 = vld [vmem:[%s181_s1 + $0x20] sm:$0xff]  ;;  %v19_v12 = vld [vmem:[%s181_s1 + $0x18] sm:$0xff] }
   0xa   :  { %40 = vmatpush.msra.mxu0 %v27_v4  ;;  %v18_v13 = vld [vmem:[%s181_s1 + $0x10] sm:$0xff]  ;;  %v17_v14 = vld [vmem:[%s181_s1 + $0x8] sm:$0xff]  ;;  %v16_v15 = vld [vmem:[%s181_s1] sm:$0xff] }
   0xb   :  { %v15_v16 = vld [vmem:[%s180_s0] sm:$0x3] }
   0xc   :  { %41 = vmatpush.msra.mxu0 %v26_v5  ;;  %v75_v17 = vld [vmem:[%s182_s2] ss:$0 sm:$0xff] }
   0xe   :  { %42 = vmatpush.msra.mxu0 %v25_v6 }
  0x10   :  { %43 = vmatpush.msra.mxu0 %v24_v7 }
  0x12   :  { %44 = vmatpush.msra.mxu0 %v23_v8 }
  0x14   :  { %45 = vmatpush.msra.mxu0 %v22_v9 }
  0x16   :  { %46 = vmatpush.msra.mxu0 %v21_v10 }
  0x18   :  { %47 = vmatpush.msra.mxu0 %v20_v11 }
  0x1a   :  { %48 = vmatpush.msra.mxu0 %v19_v12 }
  0x1c   :  { %49 = vmatpush.msra.mxu0 %v18_v13 }
  0x1e   :  { %50 = vmatpush.msra.mxu0 %v17_v14 }
  0x20   :  { %51 = vmatpush.msra.mxu0 %v16_v15 }
  0x21   :  { %52 = vmatmul.f32.vlgmr.msra.gmra.mxu0 %v15_v16 }
  0x9e   :  { %v53_v18 = vpop.f32.mrf.mxu0 }
  0x9f   :  { %v54_v19 = vadd.f32 %v75_v17, %v53_v18 }
  0xa1   :  { %57 = vst.msk [vmem:[#allocation2] sm:$0x3] %vm56_vm0, %v54_v19 }
  0xa2   :  { %68 = dma.vmem_to_hbm [thread:$0]  %s64_s22, 32, %s66_s25, [#allocation3]  }
  0xa3   :  { %100 = dma.done.wait [#allocation3], 32  }
  0xa4   :  { %101 = vsyncadd [#allocation3], 4294967264 }
  0xa5   :  { %73 = vsyncpa [#allocation3], 1 }

// kernel: cnn_forward.6
= control target key start
LH: loop header
LB: loop body
LE: loop exit
PB: predicated region body
PF: predicated region fallthrough
CT: control target
= control target key end

     0   :  { %vm62_vm0 = vcmask 261120   ;;  %s380_s1 = inlined_call_operand.vmem [shape: f32[288,32], index: 1, kind: input, shape index: {}]   ;;  %s381_s0 = inlined_call_operand.vmem [shape: f32[4,8,288], index: 0, kind: input, shape index: {}]   ;;  %s382_s2 = inlined_call_operand.vmem [shape: f32[1,32], index: 2, kind: input, shape index: {}]   ;;  %s383_s3 = inlined_call_operand.vmem [shape: f32[8,32], index: 3, kind: output, shape index: {}]  }
   0x1   :  { %v29_v0 = vld [vmem:[%s380_s1 + $0x78] sm:$0xff]  ;;  %v28_v2 = vld [vmem:[%s380_s1 + $0x70] sm:$0xff]  ;;  %v27_v4 = vld [vmem:[%s380_s1 + $0x68] sm:$0xff] }
   0x2   :  { %v45_v1 = vld [vmem:[%s380_s1 + $0xf8] sm:$0xff]  ;;  %75 = vmatpush.msra.mxu0 %v29_v0  ;;  %v44_v3 = vld [vmem:[%s380_s1 + $0xf0] sm:$0xff]  ;;  %184 = vmatpush.msra.mxu3 %v29_v0  ;;  %v43_v5 = vld [vmem:[%s380_s1 + $0xe8] sm:$0xff] }
   0x3   :  { %104 = vmatpush.msra.mxu1 %v45_v1  ;;  %v26_v6 = vld [vmem:[%s380_s1 + $0x60] sm:$0xff]  ;;  %v25_v8 = vld [vmem:[%s380_s1 + $0x58] sm:$0xff]  ;;  %v24_v11 = vld [vmem:[%s380_s1 + $0x50] sm:$0xff] }
   0x4   :  { %76 = vmatpush.msra.mxu0 %v28_v2  ;;  %185 = vmatpush.msra.mxu3 %v28_v2  ;;  %v42_v7 = vld [vmem:[%s380_s1 + $0xe0] sm:$0xff]  ;;  %v41_v9 = vld [vmem:[%s380_s1 + $0xd8] sm:$0xff]  ;;  %v40_v12 = vld [vmem:[%s380_s1 + $0xd0] sm:$0xff] }
   0x5   :  { %105 = vmatpush.msra.mxu1 %v44_v3  ;;  %v49_v10 = vld [vmem:[%s380_s1 + $0x118] sm:$0xff]  ;;  %v48_v13 = vld [vmem:[%s380_s1 + $0x110] sm:$0xff]  ;;  %v47_v14 = vld [vmem:[%s380_s1 + $0x108] sm:$0xff] }
   0x6   :  { %77 = vmatpush.msra.mxu0 %v27_v4  ;;  %186 = vmatpush.msra.mxu3 %v27_v4  ;;  %v23_v15 = vld [vmem:[%s380_s1 + $0x48] sm:$0xff]  ;;  %v46_v17 = vld [vmem:[%s380_s1 + $0x100] sm:$0xff]  ;;  %v52_v20 = vld [vmem:[%s381_s0 + $0x10] sm:$0xff] }
   0x7   :  { %106 = vmatpush.msra.mxu1 %v43_v5  ;;  %145 = vmatpush.msra.mxu2 %v49_v10  ;;  %v39_v16 = vld [vmem:[%s380_s1 + $0xc8] sm:$0xff]  ;;  %v22_v18 = vld [vmem:[%s380_s1 + $0x40] sm:$0xff]  ;;  %v21_v21 = vld [vmem:[%s380_s1 + $0x38] sm:$0xff] }
   0x8   :  { %78 = vmatpush.msra.mxu0 %v26_v6  ;;  %187 = vmatpush.msra.mxu3 %v26_v6  ;;  %v38_v19 = vld [vmem:[%s380_s1 + $0xc0] sm:$0xff]  ;;  %v37_v22 = vld [vmem:[%s380_s1 + $0xb8] sm:$0xff]  ;;  %v20_v23 = vld [vmem:[%s380_s1 + $0x30] sm:$0xff] }
   0x9   :  { %107 = vmatpush.msra.mxu1 %v42_v7  ;;  %146 = vmatpush.msra.mxu2 %v48_v13  ;;  %v36_v24 = vld [vmem:[%s380_s1 + $0xb0] sm:$0xff]  ;;  %v19_v25 = vld [vmem:[%s380_s1 + $0x28] sm:$0xff]  ;;  %v18_v27 = vld [vmem:[%s380_s1 + $0x20] sm:$0xff] }
   0xa   :  { %79 = vmatpush.msra.mxu0 %v25_v8  ;;  %188 = vmatpush.msra.mxu3 %v25_v8  ;;  %v35_v26 = vld [vmem:[%s380_s1 + $0xa8] sm:$0xff]  ;;  %v34_v28 = vld [vmem:[%s380_s1 + $0xa0] sm:$0xff]  ;;  %v17_v30 = vld [vmem:[%s380_s1 + $0x18] sm:$0xff] }
   0xb   :  { %108 = vmatpush.msra.mxu1 %v41_v9  ;;  %147 = vmatpush.msra.mxu2 %v47_v14  ;;  %v55_v29 = vld [vmem:[%s381_s0 + $0x28] sm:$0xff]  ;;  %v33_v31 = vld [vmem:[%s380_s1 + $0x98] sm:$0xff]  ;;  %v16_v32 = vld [vmem:[%s380_s1 + $0x10] sm:$0xff] }
   0xc   :  { %80 = vmatpush.msra.mxu0 %v24_v11  ;;  %189 = vmatpush.msra.mxu3 %v24_v11  ;;  %v32_v33 = vld [vmem:[%s380_s1 + $0x90] sm:$0xff]  ;;  %v15_v34 = vld [vmem:[%s380_s1 + $0x8] sm:$0xff]  ;;  %v14_v36 = vld [vmem:[%s380_s1] sm:$0xff] }
   0xd   :  { %109 = vmatpush.msra.mxu1 %v40_v12  ;;  %148 = vmatpush.msra.mxu2 %v46_v17  ;;  %v31_v35 = vld [vmem:[%s380_s1 + $0x88] sm:$0xff]  ;;  %v30_v37 = vld [vmem:[%s380_s1 + $0x80] sm:$0xff]  ;;  %v53_v41 = vld [vmem:[%s381_s0 + $0x18] sm:$0xff] }
   0xe   :  { %81 = vmatpush.msra.mxu0 %v23_v15  ;;  %190 = vmatpush.msra.mxu3 %v23_v15  ;;  %v50_v38 = vld [vmem:[%s381_s0] sm:$0xff]  ;;  %v51_v39 = vld [vmem:[%s381_s0 + $0x8] sm:$0xff]  ;;  %v61_v43 = vld [vmem:[%s381_s0 + $0x58] sm:$0xff] }
   0xf   :  { %110 = vmatpush.msra.mxu1 %v39_v16  ;;  %180 = vmatmul.msk.f32.vlgmr.msra.gmra.mxu2 %vm62_vm0, %v52_v20  ;;  %v58_v40 = vld [vmem:[%s381_s0 + $0x40] sm:$0xff]  ;;  %v56_v44 = vld [vmem:[%s381_s0 + $0x30] sm:$0xff]  ;;  %v57_v45 = vld [vmem:[%s381_s0 + $0x38] sm:$0xff] }
  0x10   :  { %82 = vmatpush.msra.mxu0 %v22_v18  ;;  %191 = vmatpush.msra.mxu3 %v22_v18  ;;  %v54_v42 = vld [vmem:[%s381_s0 + $0x20] sm:$0xff]  ;;  %v59_v46 = vld [vmem:[%s381_s0 + $0x48] sm:$0xff]  ;;  %v60_v47 = vld [vmem:[%s381_s0 + $0x50] sm:$0xff] }
  0x11   :  { %111 = vmatpush.msra.mxu1 %v38_v19  ;;  %v200_v10 = vld [vmem:[%s382_s2] ss:$0 sm:$0xff] }
  0x12   :  { %83 = vmatpush.msra.mxu0 %v21_v21  ;;  %192 = vmatpush.msra.mxu3 %v21_v21 }
  0x13   :  { %112 = vmatpush.msra.mxu1 %v37_v22 }
  0x14   :  { %84 = vmatpush.msra.mxu0 %v20_v23  ;;  %193 = vmatpush.msra.mxu3 %v20_v23 }
  0x15   :  { %113 = vmatpush.msra.mxu1 %v36_v24 }
  0x16   :  { %85 = vmatpush.msra.mxu0 %v19_v25  ;;  %194 = vmatpush.msra.mxu3 %v19_v25 }
  0x17   :  { %114 = vmatpush.msra.mxu1 %v35_v26  ;;  %181 = vmatmul.msk.f32.gmra.mxu2 %vm62_vm0, %v55_v29 }
  0x18   :  { %86 = vmatpush.msra.mxu0 %v18_v27  ;;  %195 = vmatpush.msra.mxu3 %v18_v27 }
  0x19   :  { %115 = vmatpush.msra.mxu1 %v34_v28 }
  0x1a   :  { %87 = vmatpush.msra.mxu0 %v17_v30  ;;  %196 = vmatpush.msra.mxu3 %v17_v30 }
  0x1b   :  { %116 = vmatpush.msra.mxu1 %v33_v31 }
  0x1c   :  { %88 = vmatpush.msra.mxu0 %v16_v32  ;;  %197 = vmatpush.msra.mxu3 %v16_v32 }
  0x1d   :  { %117 = vmatpush.msra.mxu1 %v32_v33 }
  0x1e   :  { %89 = vmatpush.msra.mxu0 %v15_v34  ;;  %198 = vmatpush.msra.mxu3 %v15_v34 }
  0x1f   :  { %118 = vmatpush.msra.mxu1 %v31_v35  ;;  %182 = vmatmul.msk.f32.gmra.mxu2 %vm62_vm0, %v58_v40 }
  0x20   :  { %90 = vmatpush.msra.mxu0 %v14_v36  ;;  %199 = vmatpush.msra.mxu3 %v14_v36 }
  0x21   :  { %119 = vmatpush.msra.mxu1 %v30_v37  ;;  %91 = vmatmul.f32.vlgmr.msra.gmra.mxu0 %v50_v38 }
  0x22   :  { %120 = vmatmul.f32.vlgmr.msra.gmra.mxu1 %v51_v39  ;;  %94 = vmatmul.f32.vlgmr.msra.gmra.mxu3 %v53_v41 }
  0x27   :  { %183 = vmatmul.msk.f32.gmra.mxu2 %vm62_vm0, %v61_v43 }
  0x2a   :  { %123 = vmatmul.f32.gmra.mxu1 %v54_v42  ;;  %97 = vmatmul.f32.gmra.mxu3 %v56_v44 }
  0x32   :  { %126 = vmatmul.f32.gmra.mxu1 %v57_v45  ;;  %100 = vmatmul.f32.gmra.mxu3 %v59_v46 }
  0x3a   :  { %129 = vmatmul.f32.gmra.mxu1 %v60_v47 }
  0x92   :  { %v150_v48 = vpop.f32.mrf.mxu2 }
  0x9a   :  { %v153_v50 = vpop.f32.mrf.mxu2 }
  0x9e   :  { %v92_v56 = vpop.f32.mrf.mxu0 }
  0x9f   :  { %v121_v49 = vpop.f32.mrf.mxu1 }
  0xa0   :  { %v122_v58 = vadd.f32 %v121_v49, %v92_v56 }
  0xa2   :  { %v156_v53 = vpop.f32.mrf.mxu2  ;;  %v151_v0 = vadd.f32 %v150_v48, %v122_v58 }
  0xa4   :  { %v162_v5 = vsel %vm62_vm0, %v151_v0, -inf }
  0xa5   :  { %v95_v51 = vpop.f32.mrf.mxu3 }
  0xa7   :  { %v124_v52 = vpop.f32.mrf.mxu1 }
  0xa8   :  { %v125_v57 = vadd.f32 %v124_v52, %v95_v51 }
  0xaa   :  { %v154_v60 = vadd.f32 %v153_v50, %v125_v57  ;;  %v159_v61 = vpop.f32.mrf.mxu2 }
  0xac   :  { %v163_v3 = vsel %vm62_vm0, %v154_v60, -inf }
  0xad   :  { %v98_v54 = vpop.f32.mrf.mxu3  ;;  %v166_v8 = vmax.f32 %v162_v5, %v163_v3 }
  0xaf   :  { %v127_v55 = vpop.f32.mrf.mxu1 }
  0xb0   :  { %v128_v59 = vadd.f32 %v127_v55, %v98_v54 }
  0xb2   :  { %v157_v1 = vadd.f32 %v156_v53, %v128_v59 }
  0xb4   :  { %v164_v6 = vsel %vm62_vm0, %v157_v1, -inf }
  0xb5   :  { %v101_v62 = vpop.f32.mrf.mxu3 }
  0xb7   :  { %v130_v63 = vpop.f32.mrf.mxu1 }
  0xb8   :  { %v131_v2 = vadd.f32 %v130_v63, %v101_v62 }
  0xba   :  { %v160_v4 = vadd.f32 %v159_v61, %v131_v2 }
  0xbc   :  { %v165_v7 = vsel %vm62_vm0, %v160_v4, -inf }
  0xbd   :  { %v167_v9 = vmax.f32 %v164_v6, %v165_v7 }
  0xbf   :  { %v168_v11 = vmax.f32 %v166_v8, %v167_v9 }
  0xc1   :  { %v173_v12 = vadd.f32 %v200_v10, %v168_v11 }
  0xc3   :  { %v174_v13 = vmax.f32 %v173_v12, 0.0 }
  0xc5   :  { %175 = vst.msk [vmem:[%s383_s3] sm:$0xff] %vm62_vm0, %v174_v13 }

</bundles_post_ra>
